<compile_context>
chip_gen: v6e
topology: v6e:2x2x1
jax: 0.10.0
libtpu: 0.0.40
codegen_flags: <defaults>
</compile_context>

<pallas_src>
import functools

import jax
import jax.numpy as jnp
from jax.experimental import pallas as pl
from jax.experimental.pallas import tpu as pltpu


def _round_up(x, m):
    return (x + m - 1) // m * m


def _textcnn_kernel(tok_ref, tblk_ref, wrot_ref, b_ref, maxt_ref, fcw_ref, fcb_ref,
                    o_ref, *, seq, emb_dim, fs_max, l_max):
    """One grid step == TILE_B batch rows.

    tok_ref : [TILE_B, S]               int32 token ids
    tblk_ref: [fs_max, V_PAD, W_PAD]    embedding table copied into each lane block
    wrot_ref: [fs_max, W_PAD, NF_PAD]   rotated fused conv weight slabs
    b_ref   : [1, NF_PAD]               fused conv bias
    maxt_ref: [1, NF_PAD]               max valid conv position t per filter lane
    fcw_ref : [NF_PAD, OUT_PAD]         padded FC weight
    fcb_ref : [1, OUT_PAD]              padded FC bias
    o_ref   : [TILE_B, OUT_PAD]         lane-dense output tile
    """
    tile_b = tok_ref.shape[0]
    v_pad = tblk_ref.shape[1]
    w_pad = tblk_ref.shape[2]

    tok = tok_ref[...]             # [TILE_B, S] int32 (tiny, stays resident)
    bias = b_ref[...]              # [1, NF_PAD]
    maxt = maxt_ref[...]           # [1, NF_PAD]

    def insert(window, s):
        """Write position s's embedding into lane block (s % fs_max) of the window."""
        blk = s % fs_max
        lane = jax.lax.broadcasted_iota(jnp.int32, (tile_b, w_pad), 1)
        in_blk = (lane >= blk * emb_dim) & (lane < (blk + 1) * emb_dim)
        if s < seq:
            vlane = jax.lax.broadcasted_iota(jnp.int32, (tile_b, v_pad), 1)
            onehot = (tok[:, s:s + 1] == vlane).astype(jnp.float32)     # [TILE_B, V_PAD]
            new_blk = jnp.dot(onehot, tblk_ref[blk],
                              preferred_element_type=jnp.float32)       # [TILE_B, W_PAD]
            return jnp.where(in_blk, new_blk, window)
        # Positions past the sequence end contribute zeros; the (t, filter)
        # combinations that would read them are masked out below.
        return jnp.where(in_blk, 0.0, window)

    # Rolling im2col window: at conv position t it holds emb[t .. t+fs_max-1],
    # with position s living in lane block (s % fs_max).  Only the window and
    # the pooled accumulator stay live across the unrolled loop.
    window = jnp.zeros((tile_b, w_pad), jnp.float32)
    for s in range(fs_max - 1):
        window = insert(window, s)

    pooled = None
    for t in range(l_max):
        window = insert(window, t + fs_max - 1)
        pre = jnp.dot(window, wrot_ref[t % fs_max],
                      preferred_element_type=jnp.float32) + bias        # [TILE_B, NF_PAD]
        act = jnp.maximum(pre, 0.0)
        if t > seq - fs_max:
            # Some filters run past the sequence end at this t: zero them so the
            # global max-pool (over ReLU outputs >= 0) ignores them.
            act = act * (maxt >= float(t)).astype(jnp.float32)
        pooled = act if pooled is None else jnp.maximum(pooled, act)

    # Dropout == identity (eval mode); fully-connected head, lane-dense store.
    out = jnp.dot(pooled, fcw_ref[...], preferred_element_type=jnp.float32) + fcb_ref[...]
    o_ref[...] = out


def intent_model_forward(text, params, filter_sizes, tile_b=128):
    tokens = text.T.astype(jnp.int32)               # [B, S]  (== text.permute(1, 0))
    B, S = tokens.shape
    V, E = params["embedding"].shape
    n_filters = params["conv_w"][0].shape[-1]
    nfs = len(filter_sizes)
    out_dim = params["fc_b"].shape[-1]

    fs_max = max(filter_sizes)
    fs_min = min(filter_sizes)
    l_max = S - fs_min + 1                          # largest conv output length
    nf_total = nfs * n_filters

    V_PAD = _round_up(V, 128)
    W_PAD = _round_up(fs_max * E, 128)
    NF_PAD = _round_up(nf_total, 128)
    OUT_PAD = _round_up(out_dim, 128)

    # Batch tiling: at least two grid steps when the batch allows (v7x shards
    # the "parallel" grid axis across its two TensorCores), capped at tile_b.
    B8 = _round_up(B, 8)
    TILE_B = max(8, min(tile_b, _round_up((B8 + 1) // 2, 8)))
    B_pad = _round_up(B8, TILE_B)

    tok_pad = jnp.zeros((B_pad, S), jnp.int32).at[:B].set(tokens)

    # Fused per-shift conv weights / bias, padded to NF_PAD lanes, plus the
    # per-lane maximum valid conv position (for tail-position masking).
    w_all = jnp.zeros((fs_max, E, NF_PAD), jnp.float32)
    b_all = jnp.zeros((1, NF_PAD), jnp.float32)
    maxt = jnp.full((1, NF_PAD), -1.0, jnp.float32)
    for i, fs in enumerate(filter_sizes):
        c0 = i * n_filters
        w_all = w_all.at[:fs, :, c0:c0 + n_filters].set(params["conv_w"][i].astype(jnp.float32))
        b_all = b_all.at[:, c0:c0 + n_filters].set(params["conv_b"][i].astype(jnp.float32))
        maxt = maxt.at[:, c0:c0 + n_filters].set(float(S - fs))

    # Rotated im2col weight slabs: at conv position t the window keeps position
    # s in lane block (s % fs_max), so slab r = t % fs_max has
    #   rows [j*E:(j+1)*E] = w_all[(j - r) % fs_max].
    w_rot = jnp.zeros((fs_max, W_PAD, NF_PAD), jnp.float32)
    for r in range(fs_max):
        for j in range(fs_max):
            w_rot = w_rot.at[r, j * E:(j + 1) * E, :].set(w_all[(j - r) % fs_max])

    # Embedding table, vocab padded to a 128-lane multiple, replicated once per
    # lane block so each gather matmul writes straight into its window block.
    table_pad = jnp.zeros((V_PAD, E), jnp.float32).at[:V].set(
        params["embedding"].astype(jnp.float32))
    tblk = jnp.zeros((fs_max, V_PAD, W_PAD), jnp.float32)
    for b in range(fs_max):
        tblk = tblk.at[b, :, b * E:(b + 1) * E].set(table_pad)

    fc_w = jnp.zeros((NF_PAD, OUT_PAD), jnp.float32).at[:nf_total, :out_dim].set(
        params["fc_w"].astype(jnp.float32))
    fc_b = jnp.zeros((1, OUT_PAD), jnp.float32).at[:, :out_dim].set(
        params["fc_b"].astype(jnp.float32))

    kernel = functools.partial(_textcnn_kernel, seq=S, emb_dim=E,
                               fs_max=fs_max, l_max=l_max)

    # NOTE: the grid-invariant inputs below could be single-buffered
    # (pipeline_mode=pl.Buffered(1)) to halve resident weight VMEM on v7x; at
    # these shapes the footprint is tiny, so the default pipelining is kept.
    out = pl.pallas_call(
        kernel,
        out_shape=jax.ShapeDtypeStruct((B_pad, OUT_PAD), jnp.float32),
        grid=(B_pad // TILE_B,),
        in_specs=[
            pl.BlockSpec((TILE_B, S), lambda b: (b, 0)),                 # tokens (blocked)
            pl.BlockSpec((fs_max, V_PAD, W_PAD), lambda b: (0, 0, 0)),   # per-block tables
            pl.BlockSpec((fs_max, W_PAD, NF_PAD), lambda b: (0, 0, 0)),  # rotated conv slabs
            pl.BlockSpec((1, NF_PAD), lambda b: (0, 0)),                 # fused conv bias
            pl.BlockSpec((1, NF_PAD), lambda b: (0, 0)),                 # max valid t per lane
            pl.BlockSpec((NF_PAD, OUT_PAD), lambda b: (0, 0)),           # FC weight
            pl.BlockSpec((1, OUT_PAD), lambda b: (0, 0)),                # FC bias
        ],
        out_specs=pl.BlockSpec((TILE_B, OUT_PAD), lambda b: (b, 0)),
        compiler_params=pltpu.CompilerParams(dimension_semantics=("parallel",)),
    )(tok_pad, tblk, w_rot, b_all, maxt, fc_w, fc_b)

    return out[:B, :out_dim]


def init_params(key, vocab_size, embedding_dim, n_filters, filter_sizes, output_dim):
    n_keys = 1 + 2 * len(filter_sizes) + 2
    keys = jax.random.split(key, n_keys)
    params = {
        "embedding": 0.1 * jax.random.normal(keys[0], (vocab_size, embedding_dim), jnp.float32),
        "conv_w": [],
        "conv_b": [],
    }
    for i, fs in enumerate(filter_sizes):
        params["conv_w"].append(
            0.1 * jax.random.normal(keys[1 + 2 * i], (fs, embedding_dim, n_filters), jnp.float32))
        params["conv_b"].append(
            0.01 * jax.random.normal(keys[2 + 2 * i], (1, n_filters), jnp.float32))
    params["fc_w"] = 0.1 * jax.random.normal(
        keys[-2], (len(filter_sizes) * n_filters, output_dim), jnp.float32)
    params["fc_b"] = 0.01 * jax.random.normal(keys[-1], (1, output_dim), jnp.float32)
    return params


def ref_forward(text, params, filter_sizes):
    """Pure-JAX reference for correctness checking."""
    emb = jnp.take(params["embedding"], text.T, axis=0).astype(jnp.float32)  # [B, S, E]
    B, S, _ = emb.shape
    pooled = []
    for i, fs in enumerate(filter_sizes):
        w = params["conv_w"][i]
        b = params["conv_b"][i]
        l_out = S - fs + 1
        acc = jnp.zeros((B, l_out, w.shape[-1]), jnp.float32)
        for k in range(fs):
            acc = acc + jnp.einsum("bse,ef->bsf", emb[:, k:k + l_out, :], w[k])
        acc = jax.nn.relu(acc + b[None])
        pooled.append(jnp.max(acc, axis=1))
    cat = jnp.concatenate(pooled, axis=1)
    return cat @ params["fc_w"] + params["fc_b"]


if __name__ == "__main__":
    # Small, deterministic shapes consistent with the module.
    vocab_size, embedding_dim = 50, 32
    n_filters, filter_sizes = 8, (2, 3, 4)
    output_dim, dropout, pad_idx = 5, 0.5, 0  # dropout/pad_idx unused in eval forward
    seq_len, batch = 8, 2

    root = jax.random.PRNGKey(0)
    k_text, k_params, k_text2 = jax.random.split(root, 3)
    text = jax.random.randint(k_text, (seq_len, batch), 0, vocab_size, dtype=jnp.int32)
    params = init_params(k_params, vocab_size, embedding_dim, n_filters,
                         filter_sizes, output_dim)

    out = jax.block_until_ready(intent_model_forward(text, params, filter_sizes))
    ref = jax.block_until_ready(ref_forward(text, params, filter_sizes))
    assert out.shape == (batch, output_dim)
    assert jnp.allclose(out, ref, atol=1e-4, rtol=1e-4), float(jnp.max(jnp.abs(out - ref)))

    # Multi-tile grid path: two grid steps (TILE_B sized so both v7x TCs get work).
    big_batch = 200
    text2 = jax.random.randint(k_text2, (seq_len, big_batch), 0, vocab_size, dtype=jnp.int32)
    out2 = jax.block_until_ready(intent_model_forward(text2, params, filter_sizes))
    ref2 = jax.block_until_ready(ref_forward(text2, params, filter_sizes))
    assert out2.shape == (big_batch, output_dim)
    assert jnp.allclose(out2, ref2, atol=1e-4, rtol=1e-4), float(jnp.max(jnp.abs(out2 - ref2)))

    print("KERNEL_OK")
</pallas_src>

<mosaic_0001>
module attributes {stable_mosaic.version = 11 : i64} {
  func.func @_textcnn_kernel(%arg0: i32, %arg1: memref<8x8xi32, #tpu.memory_space<vmem>>, %arg2: memref<4x128x128xf32, #tpu.memory_space<vmem>>, %arg3: memref<4x128x128xf32, #tpu.memory_space<vmem>>, %arg4: memref<1x128xf32, #tpu.memory_space<vmem>>, %arg5: memref<1x128xf32, #tpu.memory_space<vmem>>, %arg6: memref<128x128xf32, #tpu.memory_space<vmem>>, %arg7: memref<1x128xf32, #tpu.memory_space<vmem>>, %arg8: memref<8x128xf32, #tpu.memory_space<vmem>>) attributes {dimension_semantics = [#tpu.dimension_semantics<parallel>], iteration_bounds = array<i64: 1>, scalar_prefetch = 0 : i64, scratch_operands = 0 : i64, tpu.core_type = #tpu.core_type<tc>, window_params = [{transform_indices = @transform_0, window_bounds = array<i64: 8, 8>}, {pipeline_mode = #tpu.pipeline_mode<synchronous>, transform_indices = @transform_1, window_bounds = array<i64: 4, 128, 128>}, {pipeline_mode = #tpu.pipeline_mode<synchronous>, transform_indices = @transform_2, window_bounds = array<i64: 4, 128, 128>}, {pipeline_mode = #tpu.pipeline_mode<synchronous>, transform_indices = @transform_3, window_bounds = array<i64: 1, 128>}, {pipeline_mode = #tpu.pipeline_mode<synchronous>, transform_indices = @transform_4, window_bounds = array<i64: 1, 128>}, {pipeline_mode = #tpu.pipeline_mode<synchronous>, transform_indices = @transform_5, window_bounds = array<i64: 128, 128>}, {pipeline_mode = #tpu.pipeline_mode<synchronous>, transform_indices = @transform_6, window_bounds = array<i64: 1, 128>}, {transform_indices = @transform_7, window_bounds = array<i64: 8, 128>}]} {
    %c0 = arith.constant 0 : index
    %c0_0 = arith.constant 0 : index
    %0 = vector.load %arg1[%c0, %c0_0] : memref<8x8xi32, #tpu.memory_space<vmem>>, vector<8x8xi32>
    %c0_1 = arith.constant 0 : index
    %c0_2 = arith.constant 0 : index
    %1 = vector.load %arg4[%c0_1, %c0_2] : memref<1x128xf32, #tpu.memory_space<vmem>>, vector<1x128xf32>
    %c0_3 = arith.constant 0 : index
    %c0_4 = arith.constant 0 : index
    %2 = vector.load %arg5[%c0_3, %c0_4] : memref<1x128xf32, #tpu.memory_space<vmem>>, vector<1x128xf32>
    %cst = arith.constant 0.000000e+00 : f32
    %3 = vector.broadcast %cst : f32 to vector<8x128xf32>
    %4 = tpu.iota {dimensions = array<i32: 1>} : vector<8x128xi32>
    %c0_i32 = arith.constant 0 : i32
    %5 = vector.broadcast %c0_i32 : i32 to vector<8x128xi32>
    %6 = arith.cmpi sge, %4, %5 : vector<8x128xi32>
    %c32_i32 = arith.constant 32 : i32
    %7 = vector.broadcast %c32_i32 : i32 to vector<8x128xi32>
    %8 = arith.cmpi slt, %4, %7 : vector<8x128xi32>
    %9 = arith.andi %6, %8 : vector<8x128xi1>
    %10 = tpu.iota {dimensions = array<i32: 1>} : vector<8x128xi32>
    %11 = vector.extract_strided_slice %0 {offsets = [0, 0], sizes = [8, 1], strides = [1, 1]} : vector<8x8xi32> to vector<8x1xi32>
    %12 = vector.broadcast %11 : vector<8x1xi32> to vector<8x128xi32>
    %13 = arith.cmpi eq, %12, %10 : vector<8x128xi32>
    %14 = arith.extui %13 : vector<8x128xi1> to vector<8x128xi32>
    %15 = arith.sitofp %14 : vector<8x128xi32> to vector<8x128xf32>
    %c0_5 = arith.constant 0 : index
    %c0_6 = arith.constant 0 : index
    %c0_7 = arith.constant 0 : index
    %16 = vector.load %arg2[%c0_5, %c0_6, %c0_7] : memref<4x128x128xf32, #tpu.memory_space<vmem>>, vector<1x128x128xf32>
    %17 = vector.shape_cast %16 : vector<1x128x128xf32> to vector<128x128xf32>
    %cst_8 = arith.constant dense<0.000000e+00> : vector<8x128xf32>
    %18 = tpu.matmul %15, %17, %cst_8 {dimension_numbers = #tpu.dot_dimension_numbers<[1], [0], [0], [1], [0, 0, 1, 1], [], []>} : vector<8x128xf32>, vector<128x128xf32>, vector<8x128xf32> -> vector<8x128xf32>
    %19 = arith.select %9, %18, %3 : vector<8x128xi1>, vector<8x128xf32>
    %20 = tpu.iota {dimensions = array<i32: 1>} : vector<8x128xi32>
    %c32_i32_9 = arith.constant 32 : i32
    %21 = vector.broadcast %c32_i32_9 : i32 to vector<8x128xi32>
    %22 = arith.cmpi sge, %20, %21 : vector<8x128xi32>
    %c64_i32 = arith.constant 64 : i32
    %23 = vector.broadcast %c64_i32 : i32 to vector<8x128xi32>
    %24 = arith.cmpi slt, %20, %23 : vector<8x128xi32>
    %25 = arith.andi %22, %24 : vector<8x128xi1>
    %26 = tpu.iota {dimensions = array<i32: 1>} : vector<8x128xi32>
    %27 = vector.extract_strided_slice %0 {offsets = [0, 1], sizes = [8, 1], strides = [1, 1]} : vector<8x8xi32> to vector<8x1xi32>
    %28 = vector.broadcast %27 : vector<8x1xi32> to vector<8x128xi32>
    %29 = arith.cmpi eq, %28, %26 : vector<8x128xi32>
    %30 = arith.extui %29 : vector<8x128xi1> to vector<8x128xi32>
    %31 = arith.sitofp %30 : vector<8x128xi32> to vector<8x128xf32>
    %c1 = arith.constant 1 : index
    %c0_10 = arith.constant 0 : index
    %c0_11 = arith.constant 0 : index
    %32 = vector.load %arg2[%c1, %c0_10, %c0_11] : memref<4x128x128xf32, #tpu.memory_space<vmem>>, vector<1x128x128xf32>
    %33 = vector.shape_cast %32 : vector<1x128x128xf32> to vector<128x128xf32>
    %cst_12 = arith.constant dense<0.000000e+00> : vector<8x128xf32>
    %34 = tpu.matmul %31, %33, %cst_12 {dimension_numbers = #tpu.dot_dimension_numbers<[1], [0], [0], [1], [0, 0, 1, 1], [], []>} : vector<8x128xf32>, vector<128x128xf32>, vector<8x128xf32> -> vector<8x128xf32>
    %35 = arith.select %25, %34, %19 : vector<8x128xi1>, vector<8x128xf32>
    %36 = tpu.iota {dimensions = array<i32: 1>} : vector<8x128xi32>
    %c64_i32_13 = arith.constant 64 : i32
    %37 = vector.broadcast %c64_i32_13 : i32 to vector<8x128xi32>
    %38 = arith.cmpi sge, %36, %37 : vector<8x128xi32>
    %c96_i32 = arith.constant 96 : i32
    %39 = vector.broadcast %c96_i32 : i32 to vector<8x128xi32>
    %40 = arith.cmpi slt, %36, %39 : vector<8x128xi32>
    %41 = arith.andi %38, %40 : vector<8x128xi1>
    %42 = tpu.iota {dimensions = array<i32: 1>} : vector<8x128xi32>
    %43 = vector.extract_strided_slice %0 {offsets = [0, 2], sizes = [8, 1], strides = [1, 1]} : vector<8x8xi32> to vector<8x1xi32>
    %44 = vector.broadcast %43 : vector<8x1xi32> to vector<8x128xi32>
    %45 = arith.cmpi eq, %44, %42 : vector<8x128xi32>
    %46 = arith.extui %45 : vector<8x128xi1> to vector<8x128xi32>
    %47 = arith.sitofp %46 : vector<8x128xi32> to vector<8x128xf32>
    %c2 = arith.constant 2 : index
    %c0_14 = arith.constant 0 : index
    %c0_15 = arith.constant 0 : index
    %48 = vector.load %arg2[%c2, %c0_14, %c0_15] : memref<4x128x128xf32, #tpu.memory_space<vmem>>, vector<1x128x128xf32>
    %49 = vector.shape_cast %48 : vector<1x128x128xf32> to vector<128x128xf32>
    %cst_16 = arith.constant dense<0.000000e+00> : vector<8x128xf32>
    %50 = tpu.matmul %47, %49, %cst_16 {dimension_numbers = #tpu.dot_dimension_numbers<[1], [0], [0], [1], [0, 0, 1, 1], [], []>} : vector<8x128xf32>, vector<128x128xf32>, vector<8x128xf32> -> vector<8x128xf32>
    %51 = arith.select %41, %50, %35 : vector<8x128xi1>, vector<8x128xf32>
    %52 = tpu.iota {dimensions = array<i32: 1>} : vector<8x128xi32>
    %c96_i32_17 = arith.constant 96 : i32
    %53 = vector.broadcast %c96_i32_17 : i32 to vector<8x128xi32>
    %54 = arith.cmpi sge, %52, %53 : vector<8x128xi32>
    %c128_i32 = arith.constant 128 : i32
    %55 = vector.broadcast %c128_i32 : i32 to vector<8x128xi32>
    %56 = arith.cmpi slt, %52, %55 : vector<8x128xi32>
    %57 = arith.andi %54, %56 : vector<8x128xi1>
    %58 = tpu.iota {dimensions = array<i32: 1>} : vector<8x128xi32>
    %59 = vector.extract_strided_slice %0 {offsets = [0, 3], sizes = [8, 1], strides = [1, 1]} : vector<8x8xi32> to vector<8x1xi32>
    %60 = vector.broadcast %59 : vector<8x1xi32> to vector<8x128xi32>
    %61 = arith.cmpi eq, %60, %58 : vector<8x128xi32>
    %62 = arith.extui %61 : vector<8x128xi1> to vector<8x128xi32>
    %63 = arith.sitofp %62 : vector<8x128xi32> to vector<8x128xf32>
    %c3 = arith.constant 3 : index
    %c0_18 = arith.constant 0 : index
    %c0_19 = arith.constant 0 : index
    %64 = vector.load %arg2[%c3, %c0_18, %c0_19] : memref<4x128x128xf32, #tpu.memory_space<vmem>>, vector<1x128x128xf32>
    %65 = vector.shape_cast %64 : vector<1x128x128xf32> to vector<128x128xf32>
    %cst_20 = arith.constant dense<0.000000e+00> : vector<8x128xf32>
    %66 = tpu.matmul %63, %65, %cst_20 {dimension_numbers = #tpu.dot_dimension_numbers<[1], [0], [0], [1], [0, 0, 1, 1], [], []>} : vector<8x128xf32>, vector<128x128xf32>, vector<8x128xf32> -> vector<8x128xf32>
    %67 = arith.select %57, %66, %51 : vector<8x128xi1>, vector<8x128xf32>
    %c0_21 = arith.constant 0 : index
    %c0_22 = arith.constant 0 : index
    %c0_23 = arith.constant 0 : index
    %68 = vector.load %arg3[%c0_21, %c0_22, %c0_23] : memref<4x128x128xf32, #tpu.memory_space<vmem>>, vector<1x128x128xf32>
    %69 = vector.shape_cast %68 : vector<1x128x128xf32> to vector<128x128xf32>
    %cst_24 = arith.constant dense<0.000000e+00> : vector<8x128xf32>
    %70 = tpu.matmul %67, %69, %cst_24 {dimension_numbers = #tpu.dot_dimension_numbers<[1], [0], [0], [1], [0, 0, 1, 1], [], []>} : vector<8x128xf32>, vector<128x128xf32>, vector<8x128xf32> -> vector<8x128xf32>
    %71 = vector.broadcast %1 : vector<1x128xf32> to vector<8x128xf32>
    %72 = arith.addf %70, %71 : vector<8x128xf32>
    %cst_25 = arith.constant 0.000000e+00 : f32
    %73 = vector.broadcast %cst_25 : f32 to vector<8x128xf32>
    %74 = arith.maximumf %72, %73 : vector<8x128xf32>
    %75 = tpu.iota {dimensions = array<i32: 1>} : vector<8x128xi32>
    %c0_i32_26 = arith.constant 0 : i32
    %76 = vector.broadcast %c0_i32_26 : i32 to vector<8x128xi32>
    %77 = arith.cmpi sge, %75, %76 : vector<8x128xi32>
    %c32_i32_27 = arith.constant 32 : i32
    %78 = vector.broadcast %c32_i32_27 : i32 to vector<8x128xi32>
    %79 = arith.cmpi slt, %75, %78 : vector<8x128xi32>
    %80 = arith.andi %77, %79 : vector<8x128xi1>
    %81 = tpu.iota {dimensions = array<i32: 1>} : vector<8x128xi32>
    %82 = vector.extract_strided_slice %0 {offsets = [0, 4], sizes = [8, 1], strides = [1, 1]} : vector<8x8xi32> to vector<8x1xi32>
    %83 = vector.broadcast %82 : vector<8x1xi32> to vector<8x128xi32>
    %84 = arith.cmpi eq, %83, %81 : vector<8x128xi32>
    %85 = arith.extui %84 : vector<8x128xi1> to vector<8x128xi32>
    %86 = arith.sitofp %85 : vector<8x128xi32> to vector<8x128xf32>
    %c0_28 = arith.constant 0 : index
    %c0_29 = arith.constant 0 : index
    %c0_30 = arith.constant 0 : index
    %87 = vector.load %arg2[%c0_28, %c0_29, %c0_30] : memref<4x128x128xf32, #tpu.memory_space<vmem>>, vector<1x128x128xf32>
    %88 = vector.shape_cast %87 : vector<1x128x128xf32> to vector<128x128xf32>
    %cst_31 = arith.constant dense<0.000000e+00> : vector<8x128xf32>
    %89 = tpu.matmul %86, %88, %cst_31 {dimension_numbers = #tpu.dot_dimension_numbers<[1], [0], [0], [1], [0, 0, 1, 1], [], []>} : vector<8x128xf32>, vector<128x128xf32>, vector<8x128xf32> -> vector<8x128xf32>
    %90 = arith.select %80, %89, %67 : vector<8x128xi1>, vector<8x128xf32>
    %c1_32 = arith.constant 1 : index
    %c0_33 = arith.constant 0 : index
    %c0_34 = arith.constant 0 : index
    %91 = vector.load %arg3[%c1_32, %c0_33, %c0_34] : memref<4x128x128xf32, #tpu.memory_space<vmem>>, vector<1x128x128xf32>
    %92 = vector.shape_cast %91 : vector<1x128x128xf32> to vector<128x128xf32>
    %cst_35 = arith.constant dense<0.000000e+00> : vector<8x128xf32>
    %93 = tpu.matmul %90, %92, %cst_35 {dimension_numbers = #tpu.dot_dimension_numbers<[1], [0], [0], [1], [0, 0, 1, 1], [], []>} : vector<8x128xf32>, vector<128x128xf32>, vector<8x128xf32> -> vector<8x128xf32>
    %94 = vector.broadcast %1 : vector<1x128xf32> to vector<8x128xf32>
    %95 = arith.addf %93, %94 : vector<8x128xf32>
    %cst_36 = arith.constant 0.000000e+00 : f32
    %96 = vector.broadcast %cst_36 : f32 to vector<8x128xf32>
    %97 = arith.maximumf %95, %96 : vector<8x128xf32>
    %98 = arith.maximumf %74, %97 : vector<8x128xf32>
    %99 = tpu.iota {dimensions = array<i32: 1>} : vector<8x128xi32>
    %c32_i32_37 = arith.constant 32 : i32
    %100 = vector.broadcast %c32_i32_37 : i32 to vector<8x128xi32>
    %101 = arith.cmpi sge, %99, %100 : vector<8x128xi32>
    %c64_i32_38 = arith.constant 64 : i32
    %102 = vector.broadcast %c64_i32_38 : i32 to vector<8x128xi32>
    %103 = arith.cmpi slt, %99, %102 : vector<8x128xi32>
    %104 = arith.andi %101, %103 : vector<8x128xi1>
    %105 = tpu.iota {dimensions = array<i32: 1>} : vector<8x128xi32>
    %106 = vector.extract_strided_slice %0 {offsets = [0, 5], sizes = [8, 1], strides = [1, 1]} : vector<8x8xi32> to vector<8x1xi32>
    %107 = vector.broadcast %106 : vector<8x1xi32> to vector<8x128xi32>
    %108 = arith.cmpi eq, %107, %105 : vector<8x128xi32>
    %109 = arith.extui %108 : vector<8x128xi1> to vector<8x128xi32>
    %110 = arith.sitofp %109 : vector<8x128xi32> to vector<8x128xf32>
    %c1_39 = arith.constant 1 : index
    %c0_40 = arith.constant 0 : index
    %c0_41 = arith.constant 0 : index
    %111 = vector.load %arg2[%c1_39, %c0_40, %c0_41] : memref<4x128x128xf32, #tpu.memory_space<vmem>>, vector<1x128x128xf32>
    %112 = vector.shape_cast %111 : vector<1x128x128xf32> to vector<128x128xf32>
    %cst_42 = arith.constant dense<0.000000e+00> : vector<8x128xf32>
    %113 = tpu.matmul %110, %112, %cst_42 {dimension_numbers = #tpu.dot_dimension_numbers<[1], [0], [0], [1], [0, 0, 1, 1], [], []>} : vector<8x128xf32>, vector<128x128xf32>, vector<8x128xf32> -> vector<8x128xf32>
    %114 = arith.select %104, %113, %90 : vector<8x128xi1>, vector<8x128xf32>
    %c2_43 = arith.constant 2 : index
    %c0_44 = arith.constant 0 : index
    %c0_45 = arith.constant 0 : index
    %115 = vector.load %arg3[%c2_43, %c0_44, %c0_45] : memref<4x128x128xf32, #tpu.memory_space<vmem>>, vector<1x128x128xf32>
    %116 = vector.shape_cast %115 : vector<1x128x128xf32> to vector<128x128xf32>
    %cst_46 = arith.constant dense<0.000000e+00> : vector<8x128xf32>
    %117 = tpu.matmul %114, %116, %cst_46 {dimension_numbers = #tpu.dot_dimension_numbers<[1], [0], [0], [1], [0, 0, 1, 1], [], []>} : vector<8x128xf32>, vector<128x128xf32>, vector<8x128xf32> -> vector<8x128xf32>
    %118 = vector.broadcast %1 : vector<1x128xf32> to vector<8x128xf32>
    %119 = arith.addf %117, %118 : vector<8x128xf32>
    %cst_47 = arith.constant 0.000000e+00 : f32
    %120 = vector.broadcast %cst_47 : f32 to vector<8x128xf32>
    %121 = arith.maximumf %119, %120 : vector<8x128xf32>
    %122 = arith.maximumf %98, %121 : vector<8x128xf32>
    %123 = tpu.iota {dimensions = array<i32: 1>} : vector<8x128xi32>
    %c64_i32_48 = arith.constant 64 : i32
    %124 = vector.broadcast %c64_i32_48 : i32 to vector<8x128xi32>
    %125 = arith.cmpi sge, %123, %124 : vector<8x128xi32>
    %c96_i32_49 = arith.constant 96 : i32
    %126 = vector.broadcast %c96_i32_49 : i32 to vector<8x128xi32>
    %127 = arith.cmpi slt, %123, %126 : vector<8x128xi32>
    %128 = arith.andi %125, %127 : vector<8x128xi1>
    %129 = tpu.iota {dimensions = array<i32: 1>} : vector<8x128xi32>
    %130 = vector.extract_strided_slice %0 {offsets = [0, 6], sizes = [8, 1], strides = [1, 1]} : vector<8x8xi32> to vector<8x1xi32>
    %131 = vector.broadcast %130 : vector<8x1xi32> to vector<8x128xi32>
    %132 = arith.cmpi eq, %131, %129 : vector<8x128xi32>
    %133 = arith.extui %132 : vector<8x128xi1> to vector<8x128xi32>
    %134 = arith.sitofp %133 : vector<8x128xi32> to vector<8x128xf32>
    %c2_50 = arith.constant 2 : index
    %c0_51 = arith.constant 0 : index
    %c0_52 = arith.constant 0 : index
    %135 = vector.load %arg2[%c2_50, %c0_51, %c0_52] : memref<4x128x128xf32, #tpu.memory_space<vmem>>, vector<1x128x128xf32>
    %136 = vector.shape_cast %135 : vector<1x128x128xf32> to vector<128x128xf32>
    %cst_53 = arith.constant dense<0.000000e+00> : vector<8x128xf32>
    %137 = tpu.matmul %134, %136, %cst_53 {dimension_numbers = #tpu.dot_dimension_numbers<[1], [0], [0], [1], [0, 0, 1, 1], [], []>} : vector<8x128xf32>, vector<128x128xf32>, vector<8x128xf32> -> vector<8x128xf32>
    %138 = arith.select %128, %137, %114 : vector<8x128xi1>, vector<8x128xf32>
    %c3_54 = arith.constant 3 : index
    %c0_55 = arith.constant 0 : index
    %c0_56 = arith.constant 0 : index
    %139 = vector.load %arg3[%c3_54, %c0_55, %c0_56] : memref<4x128x128xf32, #tpu.memory_space<vmem>>, vector<1x128x128xf32>
    %140 = vector.shape_cast %139 : vector<1x128x128xf32> to vector<128x128xf32>
    %cst_57 = arith.constant dense<0.000000e+00> : vector<8x128xf32>
    %141 = tpu.matmul %138, %140, %cst_57 {dimension_numbers = #tpu.dot_dimension_numbers<[1], [0], [0], [1], [0, 0, 1, 1], [], []>} : vector<8x128xf32>, vector<128x128xf32>, vector<8x128xf32> -> vector<8x128xf32>
    %142 = vector.broadcast %1 : vector<1x128xf32> to vector<8x128xf32>
    %143 = arith.addf %141, %142 : vector<8x128xf32>
    %cst_58 = arith.constant 0.000000e+00 : f32
    %144 = vector.broadcast %cst_58 : f32 to vector<8x128xf32>
    %145 = arith.maximumf %143, %144 : vector<8x128xf32>
    %146 = arith.maximumf %122, %145 : vector<8x128xf32>
    %147 = tpu.iota {dimensions = array<i32: 1>} : vector<8x128xi32>
    %c96_i32_59 = arith.constant 96 : i32
    %148 = vector.broadcast %c96_i32_59 : i32 to vector<8x128xi32>
    %149 = arith.cmpi sge, %147, %148 : vector<8x128xi32>
    %c128_i32_60 = arith.constant 128 : i32
    %150 = vector.broadcast %c128_i32_60 : i32 to vector<8x128xi32>
    %151 = arith.cmpi slt, %147, %150 : vector<8x128xi32>
    %152 = arith.andi %149, %151 : vector<8x128xi1>
    %153 = tpu.iota {dimensions = array<i32: 1>} : vector<8x128xi32>
    %154 = vector.extract_strided_slice %0 {offsets = [0, 7], sizes = [8, 1], strides = [1, 1]} : vector<8x8xi32> to vector<8x1xi32>
    %155 = vector.broadcast %154 : vector<8x1xi32> to vector<8x128xi32>
    %156 = arith.cmpi eq, %155, %153 : vector<8x128xi32>
    %157 = arith.extui %156 : vector<8x128xi1> to vector<8x128xi32>
    %158 = arith.sitofp %157 : vector<8x128xi32> to vector<8x128xf32>
    %c3_61 = arith.constant 3 : index
    %c0_62 = arith.constant 0 : index
    %c0_63 = arith.constant 0 : index
    %159 = vector.load %arg2[%c3_61, %c0_62, %c0_63] : memref<4x128x128xf32, #tpu.memory_space<vmem>>, vector<1x128x128xf32>
    %160 = vector.shape_cast %159 : vector<1x128x128xf32> to vector<128x128xf32>
    %cst_64 = arith.constant dense<0.000000e+00> : vector<8x128xf32>
    %161 = tpu.matmul %158, %160, %cst_64 {dimension_numbers = #tpu.dot_dimension_numbers<[1], [0], [0], [1], [0, 0, 1, 1], [], []>} : vector<8x128xf32>, vector<128x128xf32>, vector<8x128xf32> -> vector<8x128xf32>
    %162 = arith.select %152, %161, %138 : vector<8x128xi1>, vector<8x128xf32>
    %c0_65 = arith.constant 0 : index
    %c0_66 = arith.constant 0 : index
    %c0_67 = arith.constant 0 : index
    %163 = vector.load %arg3[%c0_65, %c0_66, %c0_67] : memref<4x128x128xf32, #tpu.memory_space<vmem>>, vector<1x128x128xf32>
    %164 = vector.shape_cast %163 : vector<1x128x128xf32> to vector<128x128xf32>
    %cst_68 = arith.constant dense<0.000000e+00> : vector<8x128xf32>
    %165 = tpu.matmul %162, %164, %cst_68 {dimension_numbers = #tpu.dot_dimension_numbers<[1], [0], [0], [1], [0, 0, 1, 1], [], []>} : vector<8x128xf32>, vector<128x128xf32>, vector<8x128xf32> -> vector<8x128xf32>
    %166 = vector.broadcast %1 : vector<1x128xf32> to vector<8x128xf32>
    %167 = arith.addf %165, %166 : vector<8x128xf32>
    %cst_69 = arith.constant 0.000000e+00 : f32
    %168 = vector.broadcast %cst_69 : f32 to vector<8x128xf32>
    %169 = arith.maximumf %167, %168 : vector<8x128xf32>
    %170 = arith.maximumf %146, %169 : vector<8x128xf32>
    %171 = tpu.iota {dimensions = array<i32: 1>} : vector<8x128xi32>
    %c0_i32_70 = arith.constant 0 : i32
    %172 = vector.broadcast %c0_i32_70 : i32 to vector<8x128xi32>
    %173 = arith.cmpi sge, %171, %172 : vector<8x128xi32>
    %c32_i32_71 = arith.constant 32 : i32
    %174 = vector.broadcast %c32_i32_71 : i32 to vector<8x128xi32>
    %175 = arith.cmpi slt, %171, %174 : vector<8x128xi32>
    %176 = arith.andi %173, %175 : vector<8x128xi1>
    %cst_72 = arith.constant 0.000000e+00 : f32
    %177 = vector.broadcast %cst_72 : f32 to vector<8x128xf32>
    %178 = arith.select %176, %177, %162 : vector<8x128xi1>, vector<8x128xf32>
    %c1_73 = arith.constant 1 : index
    %c0_74 = arith.constant 0 : index
    %c0_75 = arith.constant 0 : index
    %179 = vector.load %arg3[%c1_73, %c0_74, %c0_75] : memref<4x128x128xf32, #tpu.memory_space<vmem>>, vector<1x128x128xf32>
    %180 = vector.shape_cast %179 : vector<1x128x128xf32> to vector<128x128xf32>
    %cst_76 = arith.constant dense<0.000000e+00> : vector<8x128xf32>
    %181 = tpu.matmul %178, %180, %cst_76 {dimension_numbers = #tpu.dot_dimension_numbers<[1], [0], [0], [1], [0, 0, 1, 1], [], []>} : vector<8x128xf32>, vector<128x128xf32>, vector<8x128xf32> -> vector<8x128xf32>
    %182 = vector.broadcast %1 : vector<1x128xf32> to vector<8x128xf32>
    %183 = arith.addf %181, %182 : vector<8x128xf32>
    %cst_77 = arith.constant 0.000000e+00 : f32
    %184 = vector.broadcast %cst_77 : f32 to vector<8x128xf32>
    %185 = arith.maximumf %183, %184 : vector<8x128xf32>
    %cst_78 = arith.constant 5.000000e+00 : f32
    %186 = vector.broadcast %cst_78 : f32 to vector<1x128xf32>
    %187 = arith.cmpf oge, %2, %186 : vector<1x128xf32>
    %188 = arith.extui %187 : vector<1x128xi1> to vector<1x128xi32>
    %189 = arith.sitofp %188 : vector<1x128xi32> to vector<1x128xf32>
    %190 = vector.broadcast %189 : vector<1x128xf32> to vector<8x128xf32>
    %191 = arith.mulf %185, %190 : vector<8x128xf32>
    %192 = arith.maximumf %170, %191 : vector<8x128xf32>
    %193 = tpu.iota {dimensions = array<i32: 1>} : vector<8x128xi32>
    %c32_i32_79 = arith.constant 32 : i32
    %194 = vector.broadcast %c32_i32_79 : i32 to vector<8x128xi32>
    %195 = arith.cmpi sge, %193, %194 : vector<8x128xi32>
    %c64_i32_80 = arith.constant 64 : i32
    %196 = vector.broadcast %c64_i32_80 : i32 to vector<8x128xi32>
    %197 = arith.cmpi slt, %193, %196 : vector<8x128xi32>
    %198 = arith.andi %195, %197 : vector<8x128xi1>
    %cst_81 = arith.constant 0.000000e+00 : f32
    %199 = vector.broadcast %cst_81 : f32 to vector<8x128xf32>
    %200 = arith.select %198, %199, %178 : vector<8x128xi1>, vector<8x128xf32>
    %c2_82 = arith.constant 2 : index
    %c0_83 = arith.constant 0 : index
    %c0_84 = arith.constant 0 : index
    %201 = vector.load %arg3[%c2_82, %c0_83, %c0_84] : memref<4x128x128xf32, #tpu.memory_space<vmem>>, vector<1x128x128xf32>
    %202 = vector.shape_cast %201 : vector<1x128x128xf32> to vector<128x128xf32>
    %cst_85 = arith.constant dense<0.000000e+00> : vector<8x128xf32>
    %203 = tpu.matmul %200, %202, %cst_85 {dimension_numbers = #tpu.dot_dimension_numbers<[1], [0], [0], [1], [0, 0, 1, 1], [], []>} : vector<8x128xf32>, vector<128x128xf32>, vector<8x128xf32> -> vector<8x128xf32>
    %204 = vector.broadcast %1 : vector<1x128xf32> to vector<8x128xf32>
    %205 = arith.addf %203, %204 : vector<8x128xf32>
    %cst_86 = arith.constant 0.000000e+00 : f32
    %206 = vector.broadcast %cst_86 : f32 to vector<8x128xf32>
    %207 = arith.maximumf %205, %206 : vector<8x128xf32>
    %cst_87 = arith.constant 6.000000e+00 : f32
    %208 = vector.broadcast %cst_87 : f32 to vector<1x128xf32>
    %209 = arith.cmpf oge, %2, %208 : vector<1x128xf32>
    %210 = arith.extui %209 : vector<1x128xi1> to vector<1x128xi32>
    %211 = arith.sitofp %210 : vector<1x128xi32> to vector<1x128xf32>
    %212 = vector.broadcast %211 : vector<1x128xf32> to vector<8x128xf32>
    %213 = arith.mulf %207, %212 : vector<8x128xf32>
    %214 = arith.maximumf %192, %213 : vector<8x128xf32>
    %c0_88 = arith.constant 0 : index
    %c0_89 = arith.constant 0 : index
    %215 = vector.load %arg6[%c0_88, %c0_89] : memref<128x128xf32, #tpu.memory_space<vmem>>, vector<128x128xf32>
    %cst_90 = arith.constant dense<0.000000e+00> : vector<8x128xf32>
    %216 = tpu.matmul %214, %215, %cst_90 {dimension_numbers = #tpu.dot_dimension_numbers<[1], [0], [0], [1], [0, 0, 1, 1], [], []>} : vector<8x128xf32>, vector<128x128xf32>, vector<8x128xf32> -> vector<8x128xf32>
    %c0_91 = arith.constant 0 : index
    %c0_92 = arith.constant 0 : index
    %217 = vector.load %arg7[%c0_91, %c0_92] : memref<1x128xf32, #tpu.memory_space<vmem>>, vector<1x128xf32>
    %218 = vector.broadcast %217 : vector<1x128xf32> to vector<8x128xf32>
    %219 = arith.addf %216, %218 : vector<8x128xf32>
    %c0_93 = arith.constant 0 : index
    %c0_94 = arith.constant 0 : index
    %220 = vector.load %arg8[%c0_93, %c0_94] : memref<8x128xf32, #tpu.memory_space<vmem>>, vector<8x128xf32>
    tpu.vector_store %arg8[%c0_93, %c0_94], %219 {strides = array<i32>} : memref<8x128xf32, #tpu.memory_space<vmem>>, vector<8x128xf32>,
    return
  }
  func.func @transform_0(%arg0: i32) -> (i32, i32) {
    %c0_i32 = arith.constant 0 : i32
    %c0_i32_0 = arith.constant 0 : i32
    return %arg0, %c0_i32 : i32, i32
  }
  func.func @transform_1(%arg0: i32) -> (i32, i32, i32) {
    %c0_i32 = arith.constant 0 : i32
    %c0_i32_0 = arith.constant 0 : i32
    %c0_i32_1 = arith.constant 0 : i32
    %c0_i32_2 = arith.constant 0 : i32
    return %c0_i32, %c0_i32_0, %c0_i32_1 : i32, i32, i32
  }
  func.func @transform_2(%arg0: i32) -> (i32, i32, i32) {
    %c0_i32 = arith.constant 0 : i32
    %c0_i32_0 = arith.constant 0 : i32
    %c0_i32_1 = arith.constant 0 : i32
    %c0_i32_2 = arith.constant 0 : i32
    return %c0_i32, %c0_i32_0, %c0_i32_1 : i32, i32, i32
  }
  func.func @transform_3(%arg0: i32) -> (i32, i32) {
    %c0_i32 = arith.constant 0 : i32
    %c0_i32_0 = arith.constant 0 : i32
    %c0_i32_1 = arith.constant 0 : i32
    return %c0_i32, %c0_i32_0 : i32, i32
  }
  func.func @transform_4(%arg0: i32) -> (i32, i32) {
    %c0_i32 = arith.constant 0 : i32
    %c0_i32_0 = arith.constant 0 : i32
    %c0_i32_1 = arith.constant 0 : i32
    return %c0_i32, %c0_i32_0 : i32, i32
  }
  func.func @transform_5(%arg0: i32) -> (i32, i32) {
    %c0_i32 = arith.constant 0 : i32
    %c0_i32_0 = arith.constant 0 : i32
    %c0_i32_1 = arith.constant 0 : i32
    return %c0_i32, %c0_i32_0 : i32, i32
  }
  func.func @transform_6(%arg0: i32) -> (i32, i32) {
    %c0_i32 = arith.constant 0 : i32
    %c0_i32_0 = arith.constant 0 : i32
    %c0_i32_1 = arith.constant 0 : i32
    return %c0_i32, %c0_i32_0 : i32, i32
  }
  func.func @transform_7(%arg0: i32) -> (i32, i32) {
    %c0_i32 = arith.constant 0 : i32
    %c0_i32_0 = arith.constant 0 : i32
    return %arg0, %c0_i32 : i32, i32
  }
}

</mosaic_0001>

<bundles_post_ra>
// kernel: tpu_custom_call.1
= control target key start
LH: loop header
LB: loop body
LE: loop exit
PB: predicated region body
PF: predicated region fallthrough
CT: control target
= control target key end

     0   :  { %12 = vsyncpa [#allocation3], 0  ;;  %s3343_s0 = inlined_call_operand.hbm [shape: s32[8,8], index: 0, kind: input, shape index: {}]   ;;  %s3344_s1 = inlined_call_operand.hbm [shape: f32[4,128,128], index: 1, kind: input, shape index: {}]   ;;  %s3345_s2 = inlined_call_operand.hbm [shape: f32[4,128,128], index: 2, kind: input, shape index: {}]   ;;  %s3346_s3 = inlined_call_operand.vmem [shape: f32[1,128], index: 3, kind: input, shape index: {}]   ;;  %s3347_s4 = inlined_call_operand.vmem [shape: f32[1,128], index: 4, kind: input, shape index: {}]   ;;  %s3348_s5 = inlined_call_operand.hbm [shape: f32[128,128], index: 5, kind: input, shape index: {}]   ;;  %s3349_s6 = inlined_call_operand.vmem [shape: f32[1,128], index: 6, kind: input, shape index: {}]   ;;  %s3350_s7 = inlined_call_operand.hbm [shape: f32[8,128], index: 7, kind: output, shape index: {}]  }
   0x1   :  { %13 = vsyncpa [#allocation6], 0 }
   0x2   :  { %14 = vsyncpa [#allocation9], 0 }
   0x3   :  { %15 = vsyncpa [#allocation4], 0  ;;  %s2480_s24 = smov [#allocation5]  }
   0x4   :  { %s31_s25 = sshll.u32 %s2480_s24, 4  ;;  %s32_s25 = int_to_ptr.vmem [resolvable:$true] %s31_s25 }
   0x5   :  { %s2380_s26 = scalar_lea.vmem %s32_s25, 8192  ;;  %p2385_p1 = scmp.lt.s32.totalorder %s32_s25, %s32_s25 }
   0x6   :  { %p2381_p0 = scmp.ne.s32.totalorder %s32_s25, %s2380_s26  ;;  %p2386_p2 = scmp.lt.s32.totalorder %s2380_s26, %s2380_s26 }
   0x8   :  { %p2387_p3 = por %p2386_p2, %p2385_p1 }
   0xa   :  { %p2388_p4 = pnand %p2387_p3, %p2381_p0 }
   0xc   :  { %2391 = shalt.err (!%p2388_p4)
}
   0xd   :  { %s2481_s27 = smov 128   ;;  %s2482_s28 = smov 8  }
   0xe   :  { %37 = dma.hbm_to_vmem [thread:$0]  %s3344_s1, 8192, %s32_s25, [#allocation6], %s2481_s27, %s2481_s27, %s2482_s28  }
   0xf   :  { %s2483_s8 = smov [#allocation2]   ;;  %s2484_s10 = smov [#allocation7]  }
  0x10   :  { %s22_s9 = sshll.u32 %s2483_s8, 4  ;;  %s43_s11 = sshll.u32 %s2484_s10, 4  ;;  %s23_s9 = int_to_ptr.vmem [resolvable:$true] %s22_s9  ;;  %s44_s11 = int_to_ptr.vmem [resolvable:$true] %s43_s11 }
  0x11   :  { %s2400_s12 = scalar_lea.vmem %s23_s9, 128  ;;  %p2405_p6 = scmp.lt.s32.totalorder %s23_s9, %s23_s9 }
  0x12   :  { %p2401_p5 = scmp.ne.s32.totalorder %s23_s9, %s2400_s12  ;;  %p2406_p7 = scmp.lt.s32.totalorder %s2400_s12, %s2400_s12 }
  0x14   :  { %p2407_p8 = por %p2406_p7, %p2405_p6 }
  0x16   :  { %p2408_p9 = pnand %p2407_p8, %p2401_p5 }
  0x18   :  { %2411 = shalt.err (!%p2408_p9)
}
  0x19   :  { %25 = dma.hbm_to_vmem [thread:$0]  %s3343_s0, 128, %s23_s9, [#allocation3]  }
  0x1a   :  { %s2420_s15 = scalar_lea.vmem %s44_s11, 8192  ;;  %p2425_p11 = scmp.lt.s32.totalorder %s44_s11, %s44_s11 }
  0x1b   :  { %p2421_p10 = scmp.ne.s32.totalorder %s44_s11, %s2420_s15  ;;  %p2426_p12 = scmp.lt.s32.totalorder %s2420_s15, %s2420_s15 }
  0x1d   :  { %p2427_p13 = por %p2426_p12, %p2425_p11 }
  0x1f   :  { %p2428_p0 = pnand %p2427_p13, %p2421_p10 }
  0x21   :  { %2431 = shalt.err (!%p2428_p0)
}
  0x22   :  { %49 = dma.hbm_to_vmem [thread:$0]  %s3345_s2, 8192, %s44_s11, [#allocation6], %s2481_s27, %s2481_s27, %s2482_s28  }
  0x23   :  { %s2485_s17 = smov [#allocation8]  }
  0x24   :  { %s59_s18 = sshll.u32 %s2485_s17, 4  ;;  %s60_s18 = int_to_ptr.vmem [resolvable:$true] %s59_s18 }
  0x25   :  { %s2440_s19 = scalar_lea.vmem %s60_s18, 2048  ;;  %p2445_p2 = scmp.lt.s32.totalorder %s60_s18, %s60_s18 }
  0x26   :  { %p2441_p1 = scmp.ne.s32.totalorder %s60_s18, %s2440_s19  ;;  %p2446_p3 = scmp.lt.s32.totalorder %s2440_s19, %s2440_s19 }
  0x28   :  { %p2447_p4 = por %p2446_p3, %p2445_p2 }
  0x2a   :  { %p2448_p5 = pnand %p2447_p4, %p2441_p1 }
  0x2c   :  { %2451 = shalt.err (!%p2448_p5)
}
  0x2d   :  { %65 = dma.hbm_to_vmem [thread:$0]  %s3348_s5, 2048, %s60_s18, [#allocation9], %s2481_s27, %s2481_s27, %s2482_s28  }
  0x2e   :  { %2472 = dma.done.wait [#allocation3], 128  }
  0x2f   :  { %2473 = vsyncadd [#allocation3], 4294967168 }
  0x30   :  { %2474 = dma.done.wait [#allocation6], 16384  }
  0x31   :  { %2475 = vsyncadd [#allocation6], 4294950912 }
  0x32   :  { %2476 = dma.done.wait [#allocation9], 2048  }
  0x33   :  { %2477 = vsyncadd [#allocation9], 4294965248  ;;  %v2486_v0 = vmov 0   ;;  %v2487_v1 = vmov 2   ;;  %v2488_v2 = vmov 0.0   ;;  %vm2489_vm0 = vmmov 0  }
  0x34   :  { %2363 = vset.pattern.permute.xlu0 %v2486_v0  ;;  %2365 = vset.pattern.permute.xlu1 %v2487_v1  ;;  %v2565_v3 = vld [vmem:[#allocation2] sm:$0xff]  ;;  %v2571_v5 = vld [vmem:[#allocation5 + $0x70] sm:$0xff]  ;;  %v2490_v8 = vmov 1   ;;  %v2491_v9 = vmov 3   ;;  %v2583_v10 = vld [vmem:[#allocation5 + $0x68] sm:$0xff]  ;;  %v2492_v13 = vmov 4   ;;  %v3351_v42 = vlaneseq }
  0x35   :  { %1785 = vmatprep.subr.mxu0 %v2488_v2  ;;  %1820 = vmatprep.subr.mxu1 %v2488_v2  ;;  %v2567_v4 = vld [vmem:[#allocation5 + $0x78] sm:$0xff]  ;;  %v2577_v7 = vld [vmem:[#allocation5 + $0xf0] sm:$0xff]  ;;  %v2585_v11 = vld [vmem:[#allocation5 + $0xe8] sm:$0xff]  ;;  %v2493_v16 = vmov 5   ;;  %v2494_v40 = vmov 6   ;;  %v2495_v41 = vmov 7  }
  0x36   :  { %1817 = vmatprep.mubr.msk.f32.mxu0 %vm2489_vm0, %v2488_v2  ;;  %1852 = vmatprep.mubr.msk.f32.mxu1 %vm2489_vm0, %v2488_v2  ;;  %v2573_v6 = vld [vmem:[#allocation5 + $0xf8] sm:$0xff]  ;;  %v2590_v12 = vld [vmem:[#allocation5 + $0x60] sm:$0xff]  ;;  %v2605_v17 = vld [vmem:[#allocation5 + $0x50] sm:$0xff]  ;;  %v2704_v43 = vand.u32 127, %v3351_v42  ;;  %v3352_v46 = vmov 1.0   ;;  %s2497_s23 = smov [#allocation10]  }
  0x37   :  { %89 = vperm.xlu0 %2363, %v2565_v3   ;;  %282 = vperm.xlu1 %2365, %v2565_v3   ;;  %v2598_v14 = vld [vmem:[#allocation5 + $0x58] sm:$0xff]  ;;  %v2600_v15 = vld [vmem:[#allocation5 + $0xe0] sm:$0xff]  ;;  %v2612_v19 = vld [vmem:[#allocation5 + $0x48] sm:$0xff]  ;;  %s1478_s24 = sshll.u32 %s2497_s23, 4  ;;  %s1479_s24 = int_to_ptr.vmem [resolvable:$true] %s1478_s24 }
  0x38   :  { %1786 = vmatpush3.msra.mxu0 %v2567_v4  ;;  %1821 = vmatpush3.msra.mxu1 %v2573_v6  ;;  %v2607_v18 = vld [vmem:[#allocation5 + $0xd8] sm:$0xff]  ;;  %v2615_v20 = vld [vmem:[#allocation5 + $0xd0] sm:$0xff]  ;;  %v2620_v21 = vld [vmem:[#allocation5 + $0x40] sm:$0xff]  ;;  %vm181_vm9 = vcmp.ge.s32.totalorder %v2704_v43, 32  ;;  %vm182_vm10 = vcmp.lt.s32.totalorder %v2704_v43, 64  ;;  %vm278_vm11 = vcmp.ge.s32.totalorder %v2704_v43, 64  ;;  %p2457_p7 = scmp.lt.s32.totalorder %s1479_s24, %s1479_s24 }
  0x39   :  { %1787 = vmatprep.subr.mxu0 %v2488_v2  ;;  %1822 = vmatprep.subr.mxu1 %v2488_v2  ;;  %v2623_v22 = vld [vmem:[#allocation5 + $0xc8] sm:$0xff]  ;;  %v2628_v23 = vld [vmem:[#allocation5 + $0x38] sm:$0xff]  ;;  %v2631_v24 = vld [vmem:[#allocation5 + $0xc0] sm:$0xff]  ;;  %vm279_vm12 = vcmp.lt.s32.totalorder %v2704_v43, 96  ;;  %vm86_vm13 = vcmp.lt.s32.totalorder %v2704_v43, 32  ;;  %s2452_s25 = scalar_lea.vmem %s1479_s24, 128 }
  0x3a   :  { %1788 = vmatpush3.msra.mxu0 %v2571_v5  ;;  %1823 = vmatpush3.msra.mxu1 %v2577_v7  ;;  %v2636_v25 = vld [vmem:[#allocation5 + $0x30] sm:$0xff]  ;;  %v2639_v26 = vld [vmem:[#allocation5 + $0xb8] sm:$0xff]  ;;  %v2644_v27 = vld [vmem:[#allocation5 + $0x28] sm:$0xff]  ;;  %p2453_p6 = scmp.ne.s32.totalorder %s1479_s24, %s2452_s25  ;;  %p2458_p8 = scmp.lt.s32.totalorder %s2452_s25, %s2452_s25 }
  0x3b   :  { %2364 = vset.pattern.permute.xlu0 %v2490_v8  ;;  %2366 = vset.pattern.permute.xlu1 %v2491_v9  ;;  %v2647_v28 = vld [vmem:[#allocation5 + $0xb0] sm:$0xff]  ;;  %v2652_v29 = vld [vmem:[#allocation5 + $0x20] sm:$0xff]  ;;  %v2655_v30 = vld [vmem:[#allocation5 + $0xa8] sm:$0xff] }
  0x3c   :  { %185 = vperm.xlu0 %2364, %v2565_v3   ;;  %379 = vperm.xlu1 %2366, %v2565_v3   ;;  %v2660_v31 = vld [vmem:[#allocation5 + $0x18] sm:$0xff]  ;;  %v2663_v32 = vld [vmem:[#allocation5 + $0xa0] sm:$0xff]  ;;  %v2668_v33 = vld [vmem:[#allocation5 + $0x10] sm:$0xff]  ;;  %p2459_p9 = por %p2458_p8, %p2457_p7 }
  0x3d   :  { %1789 = vmatprep.subr.mxu0 %v2488_v2  ;;  %1824 = vmatprep.subr.mxu1 %v2488_v2  ;;  %v2671_v34 = vld [vmem:[#allocation5 + $0x98] sm:$0xff]  ;;  %v2676_v35 = vld [vmem:[#allocation5 + $0x8] sm:$0xff]  ;;  %v2679_v36 = vld [vmem:[#allocation5 + $0x90] sm:$0xff] }
  0x3e   :  { %1790 = vmatpush3.msra.mxu0 %v2583_v10  ;;  %1825 = vmatpush3.msra.mxu1 %v2585_v11  ;;  %v2684_v37 = vld [vmem:[#allocation5] sm:$0xff]  ;;  %v2687_v38 = vld [vmem:[#allocation5 + $0x88] sm:$0xff]  ;;  %v2706_v45 = vld [vmem:[#allocation5 + $0x178] sm:$0xff]  ;;  %p2460_p10 = pnand %p2459_p9, %p2453_p6 }
  0x3f   :  { %1791 = vmatprep.subr.mxu0 %v2488_v2  ;;  %1826 = vmatprep.subr.mxu1 %v2488_v2  ;;  %v2693_v39 = vld [vmem:[#allocation5 + $0x80] sm:$0xff]  ;;  %v2710_v47 = vld [vmem:[#allocation5 + $0x170] sm:$0xff]  ;;  %v2716_v48 = vld [vmem:[#allocation5 + $0x168] sm:$0xff] }
  0x40   :  { %2367 = vset.pattern.permute.xlu1 %v2492_v13  ;;  %1792 = vmatpush3.msra.mxu0 %v2590_v12  ;;  %v2719_v50 = vld [vmem:[#allocation5 + $0x1f8] sm:$0xff]  ;;  %v2723_v51 = vld [vmem:[#allocation5 + $0x160] sm:$0xff]  ;;  %v2727_v52 = vld [vmem:[#allocation5 + $0x1f0] sm:$0xff] }
  0x41   :  { %566 = vperm.xlu1 %2367, %v2565_v3   ;;  %2368 = vset.pattern.permute.xlu0 %v2493_v16  ;;  %v2731_v53 = vld [vmem:[#allocation5 + $0x158] sm:$0xff]  ;;  %v2735_v54 = vld [vmem:[#allocation5 + $0x1e8] sm:$0xff]  ;;  %v2739_v55 = vld [vmem:[#allocation5 + $0x150] sm:$0xff] }
  0x42   :  { %1793 = vmatprep.subr.mxu0 %v2488_v2  ;;  %732 = vperm.xlu0 %2368, %v2565_v3   ;;  %v2743_v56 = vld [vmem:[#allocation5 + $0x1e0] sm:$0xff]  ;;  %v2747_v57 = vld [vmem:[#allocation5 + $0x148] sm:$0xff]  ;;  %v2751_v58 = vld [vmem:[#allocation5 + $0x1d8] sm:$0xff] }
  0x43   :  { %1794 = vmatpush3.msra.mxu0 %v2598_v14  ;;  %1827 = vmatpush3.msra.mxu1 %v2600_v15  ;;  %v2755_v59 = vld [vmem:[#allocation5 + $0x140] sm:$0xff]  ;;  %v2759_v60 = vld [vmem:[#allocation5 + $0x1d0] sm:$0xff]  ;;  %v2763_v61 = vld [vmem:[#allocation5 + $0x138] sm:$0xff] }
  0x44   :  { %1795 = vmatprep.subr.mxu0 %v2488_v2  ;;  %1828 = vmatprep.subr.mxu1 %v2488_v2  ;;  %v2767_v62 = vld [vmem:[#allocation5 + $0x1c8] sm:$0xff]  ;;  %v2771_v63 = vld [vmem:[#allocation5 + $0x130] sm:$0xff]  ;;  %v2775_v0 = vld [vmem:[#allocation5 + $0x1c0] sm:$0xff] }
  0x45   :  { %1796 = vmatpush3.msra.mxu0 %v2605_v17  ;;  %1829 = vmatpush3.msra.mxu1 %v2607_v18  ;;  %v2779_v1 = vld [vmem:[#allocation5 + $0x128] sm:$0xff]  ;;  %v2787_v8 = vld [vmem:[#allocation5 + $0x120] sm:$0xff]  ;;  %v2791_v9 = vld [vmem:[#allocation5 + $0x1b0] sm:$0xff] }
  0x46   :  { %1797 = vmatprep.subr.mxu0 %v2488_v2  ;;  %1830 = vmatprep.subr.mxu1 %v2488_v2  ;;  %3359 = vst [vmem:[#allocation16_spill] sm:$0xff] %v2791_v9  ;;  %v2795_v13 = vld [vmem:[#allocation5 + $0x118] sm:$0xff]  ;;  %v2799_v16 = vld [vmem:[#allocation5 + $0x1a8] sm:$0xff]  ;;  %vm3103_vm14 = vmand %vm181_vm9, %vm182_vm10 }
  0x47   :  { %1798 = vmatpush3.msra.mxu0 %v2612_v19  ;;  %1831 = vmatpush3.msra.mxu1 %v2615_v20  ;;  %3360 = vst [vmem:[#allocation17_spill] sm:$0xff] %v2799_v16  ;;  %v2815_v42 = vld [vmem:[#allocation5 + $0x198] sm:$0xff]  ;;  %vm3107_vm15 = vmand %vm278_vm11, %vm279_vm12 }
  0x48   :  { %1799 = vmatprep.subr.mxu0 %v2488_v2  ;;  %1832 = vmatprep.subr.mxu1 %v2488_v2 }
  0x49   :  { %1800 = vmatpush3.msra.mxu0 %v2620_v21  ;;  %1833 = vmatpush3.msra.mxu1 %v2623_v22 }
  0x4a   :  { %1801 = vmatprep.subr.mxu0 %v2488_v2  ;;  %1834 = vmatprep.subr.mxu1 %v2488_v2 }
  0x4b   :  { %1802 = vmatpush3.msra.mxu0 %v2628_v23  ;;  %1835 = vmatpush3.msra.mxu1 %v2631_v24 }
  0x4c   :  { %1803 = vmatprep.subr.mxu0 %v2488_v2  ;;  %1836 = vmatprep.subr.mxu1 %v2488_v2 }
  0x4d   :  { %1804 = vmatpush3.msra.mxu0 %v2636_v25  ;;  %1837 = vmatpush3.msra.mxu1 %v2639_v26 }
  0x4e   :  { %1805 = vmatprep.subr.mxu0 %v2488_v2  ;;  %1838 = vmatprep.subr.mxu1 %v2488_v2 }
  0x4f   :  { %1806 = vmatpush3.msra.mxu0 %v2644_v27  ;;  %1839 = vmatpush3.msra.mxu1 %v2647_v28 }
  0x50   :  { %1807 = vmatprep.subr.mxu0 %v2488_v2  ;;  %1840 = vmatprep.subr.mxu1 %v2488_v2 }
  0x51   :  { %1808 = vmatpush3.msra.mxu0 %v2652_v29  ;;  %1841 = vmatpush3.msra.mxu1 %v2655_v30 }
  0x52   :  { %1809 = vmatprep.subr.mxu0 %v2488_v2  ;;  %1842 = vmatprep.subr.mxu1 %v2488_v2 }
  0x53   :  { %1810 = vmatpush3.msra.mxu0 %v2660_v31  ;;  %1843 = vmatpush3.msra.mxu1 %v2663_v32 }
  0x54   :  { %1811 = vmatprep.subr.mxu0 %v2488_v2  ;;  %1844 = vmatprep.subr.mxu1 %v2488_v2 }
  0x55   :  { %1812 = vmatpush3.msra.mxu0 %v2668_v33  ;;  %1845 = vmatpush3.msra.mxu1 %v2671_v34 }
  0x56   :  { %1813 = vmatprep.subr.mxu0 %v2488_v2  ;;  %1846 = vmatprep.subr.mxu1 %v2488_v2 }
  0x57   :  { %1814 = vmatpush3.msra.mxu0 %v2676_v35  ;;  %1847 = vmatpush3.msra.mxu1 %v2679_v36 }
  0x58   :  { %1815 = vmatprep.subr.mxu0 %v2488_v2  ;;  %1848 = vmatprep.subr.mxu1 %v2488_v2 }
  0x59   :  { %1816 = vmatpush3.msra.mxu0 %v2684_v37  ;;  %1849 = vmatpush3.msra.mxu1 %v2687_v38 }
  0x5a   :  { %1855 = vmatprep.subr.mxu0 %v2488_v2  ;;  %1850 = vmatprep.subr.mxu1 %v2488_v2 }
  0x5b   :  { %1851 = vmatpush3.msra.mxu1 %v2693_v39  ;;  %2369 = vset.pattern.permute.xlu1 %v2494_v40  ;;  %v2803_v40 = vld [vmem:[#allocation5 + $0x110] sm:$0xff] }
  0x5c   :  { %1890 = vmatprep.subr.mxu1 %v2488_v2  ;;  %898 = vperm.xlu1 %2369, %v2565_v3  }
  0x5d   :  { %2371 = vset.pattern.permute.xlu0 %v2495_v41 }
  0x60   :  { %2370 = vset.pattern.permute.xlu1 %v2495_v41  ;;  %v2807_v41 = vld [vmem:[#allocation5 + $0x1a0] sm:$0xff] }
  0x61   :  { %1064 = vperm.xlu1 %2370, %v2565_v3   ;;  %v2783_v3 = vld [vmem:[#allocation5 + $0x1b8] sm:$0xff]  ;;  %3361 = vst [vmem:[#allocation18_spill] sm:$0xff] %v2807_v41 }
  0x62   :  { %3358 = vst [vmem:[#allocation15_spill] sm:$0xff] %v2783_v3 }
  0xb2   :  { %v90_v44 = vpop.permute.xlu0 %89 }
  0xb3   :  { %vm91_vm1 = vcmp.eq.s32.totalorder %v90_v44, %v2704_v43  ;;  %v283_v44 = vpop.permute.xlu1 %282 }
  0xb4   :  { %1818 = vmatmul.mubr.msk.f32.vlgmr.msra.gmra.mxu0 %vm91_vm1, %v3352_v46  ;;  %vm284_vm3 = vcmp.eq.s32.totalorder %v283_v44, %v2704_v43  ;;  %v2835_v44 = vld [vmem:[#allocation5 + $0x180] sm:$0xff]  ;;  %vm375_vm1 = vcmp.ge.s32.totalorder %v2704_v43, 96 }
  0xb5   :  { %1856 = vmatpush3.msra.mxu0 %v2706_v45  ;;  %1887 = vmatprep.mubr.msk.f32.mxu0 %vm2489_vm0, %v2488_v2 }
  0xb6   :  { %1857 = vmatprep.subr.mxu0 %v2488_v2 }
  0xb7   :  { %1858 = vmatpush3.msra.mxu0 %v2710_v47  ;;  %v186_v49 = vpop.permute.xlu0 %185 }
  0xb8   :  { %1859 = vmatprep.subr.mxu0 %v2488_v2  ;;  %vm187_vm2 = vcmp.eq.s32.totalorder %v186_v49, %v2704_v43  ;;  %v2811_v49 = vld [vmem:[#allocation5 + $0x108] sm:$0xff] }
  0xb9   :  { %1860 = vmatpush3.msra.mxu0 %v2716_v48  ;;  %1853 = vmatmul.mubr.msk.f32.vlgmr.msra.gmra.mxu1 %vm187_vm2, %v3352_v46  ;;  %v2819_v46 = vld [vmem:[#allocation5 + $0x100] sm:$0xff]  ;;  %vm1506_vm2 = vmneg %vm86_vm13 }
  0xba   :  { %1861 = vmatprep.subr.mxu0 %v2488_v2  ;;  %1891 = vmatpush3.msra.mxu1 %v2719_v50 }
  0xbb   :  { %1862 = vmatpush3.msra.mxu0 %v2723_v51  ;;  %1892 = vmatprep.subr.mxu1 %v2488_v2 }
  0xbc   :  { %1863 = vmatprep.subr.mxu0 %v2488_v2  ;;  %1893 = vmatpush3.msra.mxu1 %v2727_v52 }
  0xbd   :  { %1864 = vmatpush3.msra.mxu0 %v2731_v53  ;;  %1894 = vmatprep.subr.mxu1 %v2488_v2 }
  0xbe   :  { %1865 = vmatprep.subr.mxu0 %v2488_v2  ;;  %1895 = vmatpush3.msra.mxu1 %v2735_v54 }
  0xbf   :  { %1866 = vmatpush3.msra.mxu0 %v2739_v55  ;;  %1896 = vmatprep.subr.mxu1 %v2488_v2 }
  0xc0   :  { %1867 = vmatprep.subr.mxu0 %v2488_v2  ;;  %1897 = vmatpush3.msra.mxu1 %v2743_v56 }
  0xc1   :  { %1868 = vmatpush3.msra.mxu0 %v2747_v57  ;;  %1898 = vmatprep.subr.mxu1 %v2488_v2 }
  0xc2   :  { %1869 = vmatprep.subr.mxu0 %v2488_v2  ;;  %1899 = vmatpush3.msra.mxu1 %v2751_v58 }
  0xc3   :  { %1870 = vmatpush3.msra.mxu0 %v2755_v59  ;;  %1900 = vmatprep.subr.mxu1 %v2488_v2 }
  0xc4   :  { %1871 = vmatprep.subr.mxu0 %v2488_v2  ;;  %1901 = vmatpush3.msra.mxu1 %v2759_v60 }
  0xc5   :  { %1872 = vmatpush3.msra.mxu0 %v2763_v61  ;;  %1902 = vmatprep.subr.mxu1 %v2488_v2 }
  0xc6   :  { %1873 = vmatprep.subr.mxu0 %v2488_v2  ;;  %1903 = vmatpush3.msra.mxu1 %v2767_v62 }
  0xc7   :  { %1874 = vmatpush3.msra.mxu0 %v2771_v63  ;;  %1904 = vmatprep.subr.mxu1 %v2488_v2 }
  0xc8   :  { %1875 = vmatprep.subr.mxu0 %v2488_v2  ;;  %1905 = vmatpush3.msra.mxu1 %v2775_v0 }
  0xc9   :  { %1876 = vmatpush3.msra.mxu0 %v2779_v1  ;;  %1906 = vmatprep.subr.mxu1 %v2488_v2 }
  0xca   :  { %1877 = vmatprep.subr.mxu0 %v2488_v2  ;;  %1907 = vmatpush3.msra.mxu1 %v2783_v3  ;;  %v3362_v3 = vmov 1.0  }
  0xcb   :  { %1878 = vmatpush3.msra.mxu0 %v2787_v8  ;;  %1908 = vmatprep.subr.mxu1 %v2488_v2 }
  0xcc   :  { %1879 = vmatprep.subr.mxu0 %v2488_v2  ;;  %1909 = vmatpush3.msra.mxu1 %v2791_v9  ;;  %v2830_v9 = vld [vmem:[#allocation5 + $0x188] sm:$0xff] }
  0xcd   :  { %1880 = vmatpush3.msra.mxu0 %v2795_v13  ;;  %1910 = vmatprep.subr.mxu1 %v2488_v2 }
  0xce   :  { %1881 = vmatprep.subr.mxu0 %v2488_v2  ;;  %1911 = vmatpush3.msra.mxu1 %v2799_v16  ;;  %v2824_v16 = vld [vmem:[#allocation5 + $0x190] sm:$0xff] }
  0xcf   :  { %1882 = vmatpush3.msra.mxu0 %v2803_v40  ;;  %1912 = vmatprep.subr.mxu1 %v2488_v2 }
  0xd0   :  { %1883 = vmatprep.subr.mxu0 %v2488_v2  ;;  %1913 = vmatpush3.msra.mxu1 %v2807_v41  ;;  %v380_v41 = vpop.permute.xlu1 %379 }
  0xd1   :  { %1884 = vmatpush3.msra.mxu0 %v2811_v49  ;;  %1914 = vmatprep.subr.mxu1 %v2488_v2  ;;  %vm381_vm4 = vcmp.eq.s32.totalorder %v380_v41, %v2704_v43  ;;  %v3156_v41 = vld [vmem:[#allocation7 + $0x168] sm:$0xff] }
  0xd2   :  { %1885 = vmatprep.subr.mxu0 %v2488_v2  ;;  %1915 = vmatpush3.msra.mxu1 %v2815_v42 }
  0xd3   :  { %1886 = vmatpush3.msra.mxu0 %v2819_v46  ;;  %1916 = vmatprep.subr.mxu1 %v2488_v2 }
  0xd4   :  { %1888 = vmatmul.mubr.msk.f32.vlgmr.msra.gmra.mxu0 %vm284_vm3, %v3362_v3  ;;  %1917 = vmatpush3.msra.mxu1 %v2824_v16 }
  0xd5   :  { %1918 = vmatprep.subr.mxu1 %v2488_v2  ;;  %1922 = vmatprep.mubr.msk.f32.mxu1 %vm2489_vm0, %v2488_v2 }
  0xd6   :  { %1919 = vmatpush3.msra.mxu1 %v2830_v9  ;;  %1925 = vmatprep.subr.mxu0 %v2488_v2 }
  0xd7   :  { %1920 = vmatprep.subr.mxu1 %v2488_v2  ;;  %1957 = vmatprep.mubr.msk.f32.mxu0 %vm2489_vm0, %v2488_v2 }
  0xd8   :  { %1921 = vmatpush3.msra.mxu1 %v2835_v44 }
  0xd9   :  { %1923 = vmatmul.mubr.msk.f32.vlgmr.msra.gmra.mxu1 %vm381_vm4, %v3362_v3  ;;  %1960 = vmatprep.subr.mxu1 %v2488_v2 }
  0xda   :  { %1961 = vmatpush3.msra.mxu1 %v2567_v4  ;;  %1992 = vmatprep.mubr.msk.f32.mxu1 %vm2489_vm0, %v2488_v2  ;;  %v567_v4 = vpop.permute.xlu1 %566 }
  0xdb   :  { %1962 = vmatprep.subr.mxu1 %v2488_v2  ;;  %vm568_vm5 = vcmp.eq.s32.totalorder %v567_v4, %v2704_v43  ;;  %v3168_v4 = vld [vmem:[#allocation7 + $0x150] sm:$0xff] }
  0xdc   :  { %1963 = vmatpush3.msra.mxu1 %v2571_v5  ;;  %v2887_v5 = vld [vmem:[#allocation7 + $0x78] sm:$0xff] }
  0xdd   :  { %1964 = vmatprep.subr.mxu1 %v2488_v2  ;;  %1926 = vmatpush3.msra.mxu0 %v2887_v5 }
  0xde   :  { %1965 = vmatpush3.msra.mxu1 %v2583_v10  ;;  %v2891_v10 = vld [vmem:[#allocation7 + $0x70] sm:$0xff]  ;;  %1927 = vmatprep.subr.mxu0 %v2488_v2 }
  0xdf   :  { %1966 = vmatprep.subr.mxu1 %v2488_v2  ;;  %1928 = vmatpush3.msra.mxu0 %v2891_v10 }
  0xe0   :  { %1967 = vmatpush3.msra.mxu1 %v2590_v12  ;;  %v2895_v12 = vld [vmem:[#allocation7 + $0x68] sm:$0xff]  ;;  %1929 = vmatprep.subr.mxu0 %v2488_v2 }
  0xe1   :  { %1968 = vmatprep.subr.mxu1 %v2488_v2  ;;  %1930 = vmatpush3.msra.mxu0 %v2895_v12 }
  0xe2   :  { %1969 = vmatpush3.msra.mxu1 %v2598_v14  ;;  %1931 = vmatprep.subr.mxu0 %v2488_v2  ;;  %v2919_v14 = vld [vmem:[#allocation7 + $0x48] sm:$0xff] }
  0xe3   :  { %1970 = vmatprep.subr.mxu1 %v2488_v2 }
  0xe4   :  { %1971 = vmatpush3.msra.mxu1 %v2605_v17  ;;  %v2931_v17 = vld [vmem:[#allocation7 + $0x38] sm:$0xff] }
  0xe5   :  { %1972 = vmatprep.subr.mxu1 %v2488_v2 }
  0xe6   :  { %1973 = vmatpush3.msra.mxu1 %v2612_v19  ;;  %v2943_v19 = vld [vmem:[#allocation7 + $0x28] sm:$0xff] }
  0xe7   :  { %1974 = vmatprep.subr.mxu1 %v2488_v2 }
  0xe8   :  { %1975 = vmatpush3.msra.mxu1 %v2620_v21  ;;  %v2955_v21 = vld [vmem:[#allocation7 + $0x18] sm:$0xff] }
  0xe9   :  { %1976 = vmatprep.subr.mxu1 %v2488_v2 }
  0xea   :  { %1977 = vmatpush3.msra.mxu1 %v2628_v23  ;;  %v2965_v23 = vld [vmem:[#allocation7 + $0x10] sm:$0xff] }
  0xeb   :  { %1978 = vmatprep.subr.mxu1 %v2488_v2 }
  0xec   :  { %1979 = vmatpush3.msra.mxu1 %v2636_v25  ;;  %v2978_v25 = vld [vmem:[#allocation7] sm:$0xff] }
  0xed   :  { %1980 = vmatprep.subr.mxu1 %v2488_v2 }
  0xee   :  { %1981 = vmatpush3.msra.mxu1 %v2644_v27  ;;  %v3363_v27 = vld [vmem:[#allocation15_spill] sm:$0xff] }
  0xef   :  { %1982 = vmatprep.subr.mxu1 %v2488_v2 }
  0xf0   :  { %1983 = vmatpush3.msra.mxu1 %v2652_v29  ;;  %v3365_v29 = vld [vmem:[#allocation17_spill] sm:$0xff] }
  0xf1   :  { %1984 = vmatprep.subr.mxu1 %v2488_v2 }
  0xf2   :  { %1985 = vmatpush3.msra.mxu1 %v2660_v31 }
  0xf3   :  { %1986 = vmatprep.subr.mxu1 %v2488_v2 }
  0xf4   :  { %1987 = vmatpush3.msra.mxu1 %v2668_v33  ;;  %v3061_v33 = vld [vmem:[#allocation7 + $0xf0] sm:$0xff] }
  0xf5   :  { %1988 = vmatprep.subr.mxu1 %v2488_v2 }
  0xf6   :  { %1989 = vmatpush3.msra.mxu1 %v2676_v35  ;;  %v3069_v35 = vld [vmem:[#allocation7 + $0xe0] sm:$0xff] }
  0xf7   :  { %1990 = vmatprep.subr.mxu1 %v2488_v2 }
  0xf8   :  { %1991 = vmatpush3.msra.mxu1 %v2684_v37  ;;  %v3077_v37 = vld [vmem:[#allocation7 + $0xd0] sm:$0xff] }
  0xf9   :  { %1993 = vmatmul.mubr.msk.f32.vlgmr.msra.gmra.mxu1 %vm568_vm5, %v3362_v3  ;;  %2030 = vmatprep.subr.mxu1 %v2488_v2 }
  0xfa   :  { %2031 = vmatpush3.msra.mxu1 %v2573_v6  ;;  %2062 = vmatprep.mubr.msk.f32.mxu1 %vm2489_vm0, %v2488_v2  ;;  %v2901_v6 = vld [vmem:[#allocation7 + $0x60] sm:$0xff] }
  0xfb   :  { %2032 = vmatprep.subr.mxu1 %v2488_v2  ;;  %1932 = vmatpush3.msra.mxu0 %v2901_v6 }
  0xfc   :  { %2033 = vmatpush3.msra.mxu1 %v2577_v7  ;;  %v2907_v7 = vld [vmem:[#allocation7 + $0x58] sm:$0xff]  ;;  %1933 = vmatprep.subr.mxu0 %v2488_v2 }
  0xfd   :  { %2034 = vmatprep.subr.mxu1 %v2488_v2  ;;  %1934 = vmatpush3.msra.mxu0 %v2907_v7 }
  0xfe   :  { %2035 = vmatpush3.msra.mxu1 %v2585_v11  ;;  %v2913_v11 = vld [vmem:[#allocation7 + $0x50] sm:$0xff]  ;;  %1935 = vmatprep.subr.mxu0 %v2488_v2 }
  0xff   :  { %2036 = vmatprep.subr.mxu1 %v2488_v2  ;;  %1936 = vmatpush3.msra.mxu0 %v2913_v11 }
 0x100   :  { %2037 = vmatpush3.msra.mxu1 %v2600_v15  ;;  %1937 = vmatprep.subr.mxu0 %v2488_v2  ;;  %v2925_v15 = vld [vmem:[#allocation7 + $0x40] sm:$0xff] }
 0x101   :  { %2038 = vmatprep.subr.mxu1 %v2488_v2  ;;  %1938 = vmatpush3.msra.mxu0 %v2919_v14 }
 0x102   :  { %2039 = vmatpush3.msra.mxu1 %v2607_v18  ;;  %1939 = vmatprep.subr.mxu0 %v2488_v2  ;;  %v2937_v18 = vld [vmem:[#allocation7 + $0x30] sm:$0xff] }
 0x103   :  { %2040 = vmatprep.subr.mxu1 %v2488_v2  ;;  %1940 = vmatpush3.msra.mxu0 %v2925_v15 }
 0x104   :  { %2041 = vmatpush3.msra.mxu1 %v2615_v20  ;;  %1941 = vmatprep.subr.mxu0 %v2488_v2  ;;  %v2949_v20 = vld [vmem:[#allocation7 + $0x20] sm:$0xff] }
 0x105   :  { %2042 = vmatprep.subr.mxu1 %v2488_v2  ;;  %1942 = vmatpush3.msra.mxu0 %v2931_v17 }
 0x106   :  { %2043 = vmatpush3.msra.mxu1 %v2623_v22  ;;  %1943 = vmatprep.subr.mxu0 %v2488_v2  ;;  %v733_v22 = vpop.permute.xlu0 %732 }
 0x107   :  { %2044 = vmatprep.subr.mxu1 %v2488_v2  ;;  %1944 = vmatpush3.msra.mxu0 %v2937_v18  ;;  %vm734_vm6 = vcmp.eq.s32.totalorder %v733_v22, %v2704_v43  ;;  %v3172_v22 = vld [vmem:[#allocation7 + $0x148] sm:$0xff] }
 0x108   :  { %2045 = vmatpush3.msra.mxu1 %v2631_v24  ;;  %1945 = vmatprep.subr.mxu0 %v2488_v2  ;;  %v2972_v24 = vld [vmem:[#allocation7 + $0x8] sm:$0xff] }
 0x109   :  { %2046 = vmatprep.subr.mxu1 %v2488_v2  ;;  %1946 = vmatpush3.msra.mxu0 %v2943_v19 }
 0x10a   :  { %2047 = vmatpush3.msra.mxu1 %v2639_v26  ;;  %1947 = vmatprep.subr.mxu0 %v2488_v2  ;;  %v899_v26 = vpop.permute.xlu1 %898 }
 0x10b   :  { %2048 = vmatprep.subr.mxu1 %v2488_v2  ;;  %1948 = vmatpush3.msra.mxu0 %v2949_v20  ;;  %vm900_vm7 = vcmp.eq.s32.totalorder %v899_v26, %v2704_v43  ;;  %v3176_v26 = vld [vmem:[#allocation7 + $0x140] sm:$0xff] }
 0x10c   :  { %2049 = vmatpush3.msra.mxu1 %v2647_v28  ;;  %1949 = vmatprep.subr.mxu0 %v2488_v2  ;;  %v3364_v28 = vld [vmem:[#allocation16_spill] sm:$0xff] }
 0x10d   :  { %2050 = vmatprep.subr.mxu1 %v2488_v2  ;;  %1950 = vmatpush3.msra.mxu0 %v2955_v21 }
 0x10e   :  { %2051 = vmatpush3.msra.mxu1 %v2655_v30  ;;  %1951 = vmatprep.subr.mxu0 %v2488_v2  ;;  %v3366_v30 = vld [vmem:[#allocation18_spill] sm:$0xff]  ;;  %v1065_v31 = vpop.permute.xlu1 %1064 }
 0x10f   :  { %2052 = vmatprep.subr.mxu1 %v2488_v2  ;;  %1952 = vmatpush3.msra.mxu0 %v2965_v23  ;;  %vm1066_vm8 = vcmp.eq.s32.totalorder %v1065_v31, %v2704_v43  ;;  %v3196_v31 = vld [vmem:[#allocation7 + $0x118] sm:$0xff] }
 0x110   :  { %2053 = vmatpush3.msra.mxu1 %v2663_v32  ;;  %1953 = vmatprep.subr.mxu0 %v2488_v2  ;;  %v3055_v32 = vld [vmem:[#allocation7 + $0xf8] sm:$0xff] }
 0x111   :  { %2054 = vmatprep.subr.mxu1 %v2488_v2  ;;  %1954 = vmatpush3.msra.mxu0 %v2972_v24  ;;  %v1389_v43 = vld [vmem:[#allocation8 + $0x58] sm:$0xff] }
 0x112   :  { %2055 = vmatpush3.msra.mxu1 %v2671_v34  ;;  %1955 = vmatprep.subr.mxu0 %v2488_v2  ;;  %v3065_v34 = vld [vmem:[#allocation7 + $0xe8] sm:$0xff] }
 0x113   :  { %2056 = vmatprep.subr.mxu1 %v2488_v2  ;;  %1956 = vmatpush3.msra.mxu0 %v2978_v25 }
 0x114   :  { %2057 = vmatpush3.msra.mxu1 %v2679_v36  ;;  %1995 = vmatprep.subr.mxu0 %v2488_v2  ;;  %v3073_v36 = vld [vmem:[#allocation7 + $0xd8] sm:$0xff] }
 0x115   :  { %2058 = vmatprep.subr.mxu1 %v2488_v2 }
 0x116   :  { %2059 = vmatpush3.msra.mxu1 %v2687_v38  ;;  %v3081_v38 = vld [vmem:[#allocation7 + $0xc8] sm:$0xff] }
 0x117   :  { %2060 = vmatprep.subr.mxu1 %v2488_v2 }
 0x118   :  { %2061 = vmatpush3.msra.mxu1 %v2693_v39  ;;  %v3085_v39 = vld [vmem:[#allocation7 + $0xc0] sm:$0xff] }
 0x119   :  { %2063 = vmatmul.mubr.msk.f32.vlgmr.msra.gmra.mxu1 %vm734_vm6, %v3362_v3  ;;  %2100 = vmatprep.subr.mxu1 %v2488_v2 }
 0x11a   :  { %2101 = vmatpush3.msra.mxu1 %v2706_v45  ;;  %2132 = vmatprep.mubr.msk.f32.mxu1 %vm2489_vm0, %v2488_v2  ;;  %v649_v45 = vld [vmem:[#allocation7 + $0xb0] sm:$0xff] }
 0x11b   :  { %2102 = vmatprep.subr.mxu1 %v2488_v2 }
 0x11c   :  { %2103 = vmatpush3.msra.mxu1 %v2710_v47  ;;  %v647_v47 = vld [vmem:[#allocation7 + $0xa0] sm:$0xff] }
 0x11d   :  { %2104 = vmatprep.subr.mxu1 %v2488_v2 }
 0x11e   :  { %2105 = vmatpush3.msra.mxu1 %v2716_v48  ;;  %v646_v48 = vld [vmem:[#allocation7 + $0x98] sm:$0xff] }
 0x11f   :  { %2106 = vmatprep.subr.mxu1 %v2488_v2 }
 0x120   :  { %2107 = vmatpush3.msra.mxu1 %v2723_v51 }
 0x121   :  { %2108 = vmatprep.subr.mxu1 %v2488_v2 }
 0x122   :  { %2109 = vmatpush3.msra.mxu1 %v2731_v53 }
 0x123   :  { %2110 = vmatprep.subr.mxu1 %v2488_v2 }
 0x124   :  { %2111 = vmatpush3.msra.mxu1 %v2739_v55 }
 0x125   :  { %2112 = vmatprep.subr.mxu1 %v2488_v2 }
 0x126   :  { %2113 = vmatpush3.msra.mxu1 %v2747_v57 }
 0x127   :  { %2114 = vmatprep.subr.mxu1 %v2488_v2 }
 0x128   :  { %2115 = vmatpush3.msra.mxu1 %v2755_v59 }
 0x129   :  { %2116 = vmatprep.subr.mxu1 %v2488_v2 }
 0x12a   :  { %2117 = vmatpush3.msra.mxu1 %v2763_v61 }
 0x12b   :  { %2118 = vmatprep.subr.mxu1 %v2488_v2 }
 0x12c   :  { %2119 = vmatpush3.msra.mxu1 %v2771_v63 }
 0x12d   :  { %2120 = vmatprep.subr.mxu1 %v2488_v2 }
 0x12e   :  { %2121 = vmatpush3.msra.mxu1 %v2779_v1 }
 0x12f   :  { %2122 = vmatprep.subr.mxu1 %v2488_v2 }
 0x130   :  { %2123 = vmatpush3.msra.mxu1 %v2787_v8 }
 0x131   :  { %2124 = vmatprep.subr.mxu1 %v2488_v2 }
 0x132   :  { %2125 = vmatpush3.msra.mxu1 %v2795_v13 }
 0x133   :  { %2126 = vmatprep.subr.mxu1 %v2488_v2 }
 0x134   :  { %2127 = vmatpush3.msra.mxu1 %v2803_v40  ;;  %v3150_v40 = vld [vmem:[#allocation7 + $0x170] sm:$0xff] }
 0x135   :  { %2128 = vmatprep.subr.mxu1 %v2488_v2 }
 0x136   :  { %2129 = vmatpush3.msra.mxu1 %v2811_v49  ;;  %v3160_v49 = vld [vmem:[#allocation7 + $0x160] sm:$0xff] }
 0x137   :  { %2130 = vmatprep.subr.mxu1 %v2488_v2 }
 0x138   :  { %2131 = vmatpush3.msra.mxu1 %v2819_v46  ;;  %v648_v46 = vld [vmem:[#allocation7 + $0xa8] sm:$0xff] }
 0x139   :  { %2133 = vmatmul.mubr.msk.f32.vlgmr.msra.gmra.mxu1 %vm900_vm7, %v3362_v3  ;;  %2170 = vmatprep.subr.mxu1 %v2488_v2 }
 0x13a   :  { %2171 = vmatpush3.msra.mxu1 %v2719_v50  ;;  %2202 = vmatprep.mubr.msk.f32.mxu1 %vm2489_vm0, %v2488_v2  ;;  %v645_v50 = vld [vmem:[#allocation7 + $0x90] sm:$0xff] }
 0x13b   :  { %2172 = vmatprep.subr.mxu1 %v2488_v2 }
 0x13c   :  { %2173 = vmatpush3.msra.mxu1 %v2727_v52  ;;  %v644_v52 = vld [vmem:[#allocation7 + $0x88] sm:$0xff] }
 0x13d   :  { %2174 = vmatprep.subr.mxu1 %v2488_v2 }
 0x13e   :  { %2175 = vmatpush3.msra.mxu1 %v2735_v54  ;;  %v643_v54 = vld [vmem:[#allocation7 + $0x80] sm:$0xff] }
 0x13f   :  { %2176 = vmatprep.subr.mxu1 %v2488_v2 }
 0x140   :  { %2177 = vmatpush3.msra.mxu1 %v2743_v56 }
 0x141   :  { %2178 = vmatprep.subr.mxu1 %v2488_v2 }
 0x142   :  { %2179 = vmatpush3.msra.mxu1 %v2751_v58  ;;  %v1497_v58 = vld [vmem:[%s3346_s3] ss:$0 sm:$0xff] }
 0x143   :  { %2180 = vmatprep.subr.mxu1 %v2488_v2 }
 0x144   :  { %2181 = vmatpush3.msra.mxu1 %v2759_v60 }
 0x145   :  { %2182 = vmatprep.subr.mxu1 %v2488_v2 }
 0x146   :  { %2183 = vmatpush3.msra.mxu1 %v2767_v62 }
 0x147   :  { %2184 = vmatprep.subr.mxu1 %v2488_v2 }
 0x148   :  { %2185 = vmatpush3.msra.mxu1 %v2775_v0 }
 0x149   :  { %2186 = vmatprep.subr.mxu1 %v2488_v2 }
 0x14a   :  { %2187 = vmatpush3.msra.mxu1 %v3363_v27  ;;  %v3180_v27 = vld [vmem:[#allocation7 + $0x138] sm:$0xff] }
 0x14b   :  { %2188 = vmatprep.subr.mxu1 %v2488_v2 }
 0x14c   :  { %2189 = vmatpush3.msra.mxu1 %v3364_v28  ;;  %v3184_v28 = vld [vmem:[#allocation7 + $0x130] sm:$0xff] }
 0x14d   :  { %2190 = vmatprep.subr.mxu1 %v2488_v2 }
 0x14e   :  { %2191 = vmatpush3.msra.mxu1 %v3365_v29  ;;  %v3188_v29 = vld [vmem:[#allocation7 + $0x128] sm:$0xff] }
 0x14f   :  { %2192 = vmatprep.subr.mxu1 %v2488_v2 }
 0x150   :  { %2193 = vmatpush3.msra.mxu1 %v3366_v30  ;;  %v3192_v30 = vld [vmem:[#allocation7 + $0x120] sm:$0xff] }
 0x151   :  { %2194 = vmatprep.subr.mxu1 %v2488_v2 }
 0x152   :  { %2195 = vmatpush3.msra.mxu1 %v2815_v42  ;;  %v650_v42 = vld [vmem:[#allocation7 + $0xb8] sm:$0xff] }
 0x153   :  { %2196 = vmatprep.subr.mxu1 %v2488_v2 }
 0x154   :  { %2197 = vmatpush3.msra.mxu1 %v2824_v16 }
 0x155   :  { %2198 = vmatprep.subr.mxu1 %v2488_v2 }
 0x156   :  { %2199 = vmatpush3.msra.mxu1 %v2830_v9  ;;  %v3145_v9 = vld [vmem:[#allocation7 + $0x178] sm:$0xff] }
 0x157   :  { %2200 = vmatprep.subr.mxu1 %v2488_v2 }
 0x158   :  { %2201 = vmatpush3.msra.mxu1 %v2835_v44  ;;  %v3164_v44 = vld [vmem:[#allocation7 + $0x158] sm:$0xff] }
 0x159   :  { %2203 = vmatmul.mubr.msk.f32.vlgmr.msra.gmra.mxu1 %vm1066_vm8, %v3362_v3  ;;  %2240 = vmatprep.subr.mxu1 %v2488_v2 }
 0x15a   :  { %2241 = vmatpush3.msra.mxu1 %v3055_v32  ;;  %2272 = vmatprep.mubr.msk.f32.mxu1 %vm2489_vm0, %v2488_v2 }
 0x15b   :  { %2242 = vmatprep.subr.mxu1 %v2488_v2 }
 0x15c   :  { %2243 = vmatpush3.msra.mxu1 %v3061_v33 }
 0x15d   :  { %2244 = vmatprep.subr.mxu1 %v2488_v2 }
 0x15e   :  { %2245 = vmatpush3.msra.mxu1 %v3065_v34 }
 0x15f   :  { %2246 = vmatprep.subr.mxu1 %v2488_v2 }
 0x160   :  { %2247 = vmatpush3.msra.mxu1 %v3069_v35 }
 0x161   :  { %2248 = vmatprep.subr.mxu1 %v2488_v2 }
 0x162   :  { %2249 = vmatpush3.msra.mxu1 %v3073_v36 }
 0x163   :  { %2250 = vmatprep.subr.mxu1 %v2488_v2 }
 0x164   :  { %2251 = vmatpush3.msra.mxu1 %v3077_v37 }
 0x165   :  { %2252 = vmatprep.subr.mxu1 %v2488_v2 }
 0x166   :  { %2253 = vmatpush3.msra.mxu1 %v3081_v38 }
 0x167   :  { %2254 = vmatprep.subr.mxu1 %v2488_v2 }
 0x168   :  { %2255 = vmatpush3.msra.mxu1 %v3085_v39 }
 0x169   :  { %2256 = vmatprep.subr.mxu1 %v2488_v2 }
 0x16a   :  { %2257 = vmatpush3.msra.mxu1 %v650_v42 }
 0x16b   :  { %2258 = vmatprep.subr.mxu1 %v2488_v2 }
 0x16c   :  { %2259 = vmatpush3.msra.mxu1 %v649_v45 }
 0x16d   :  { %2260 = vmatprep.subr.mxu1 %v2488_v2 }
 0x16e   :  { %2261 = vmatpush3.msra.mxu1 %v648_v46 }
 0x16f   :  { %2262 = vmatprep.subr.mxu1 %v2488_v2 }
 0x170   :  { %2263 = vmatpush3.msra.mxu1 %v647_v47 }
 0x171   :  { %2264 = vmatprep.subr.mxu1 %v2488_v2 }
 0x172   :  { %2265 = vmatpush3.msra.mxu1 %v646_v48 }
 0x173   :  { %2266 = vmatprep.subr.mxu1 %v2488_v2 }
 0x174   :  { %v176_v51 = vpop.f32.mrf.mxu0  ;;  %2267 = vmatpush3.msra.mxu1 %v645_v50 }
 0x175   :  { %2268 = vmatprep.subr.mxu1 %v2488_v2  ;;  %v180_v61 = vsel %vm86_vm13, %v176_v51, 0.0  ;;  %v982_v51 = vld [vmem:[#allocation7 + $0x1b8] sm:$0xff] }
 0x176   :  { %v1819_v53 = vpop.f32.mrf.mxu0  ;;  %2269 = vmatpush3.msra.mxu1 %v644_v52 }
 0x177   :  { %2270 = vmatprep.subr.mxu1 %v2488_v2  ;;  %v980_v53 = vld [vmem:[#allocation7 + $0x1a8] sm:$0xff] }
 0x178   :  { %2271 = vmatpush3.msra.mxu1 %v643_v54 }
 0x179   :  { %v273_v55 = vpop.f32.mrf.mxu1  ;;  %2310 = vmatprep.subr.mxu1 %v2488_v2 }
 0x17a   :  { %v277_v62 = vsel %vm3103_vm14, %v273_v55, %v180_v61  ;;  %v978_v55 = vld [vmem:[#allocation7 + $0x198] sm:$0xff] }
 0x17b   :  { %v1854_v56 = vpop.f32.mrf.mxu1 }
 0x17c   :  { %v977_v56 = vld [vmem:[#allocation7 + $0x190] sm:$0xff] }
 0x194   :  { %v370_v57 = vpop.f32.mrf.mxu0 }
 0x195   :  { %v374_v63 = vsel %vm3107_vm15, %v370_v57, %v277_v62  ;;  %v976_v57 = vld [vmem:[#allocation7 + $0x188] sm:$0xff] }
 0x196   :  { %v1889_v60 = vpop.f32.mrf.mxu0 }
 0x197   :  { %v975_v60 = vld [vmem:[#allocation7 + $0x180] sm:$0xff] }
 0x199   :  { %v467_v0 = vpop.f32.mrf.mxu1 }
 0x19a   :  { %v471_v1 = vsel %vm375_vm1, %v467_v0, %v374_v63  ;;  %v1382_v0 = vld [vmem:[#allocation8 + $0x20] sm:$0xff] }
 0x19b   :  { %v1924_v3 = vpop.f32.mrf.mxu1  ;;  %1958 = vmatmul.mubr.f32.vlgmr.msra.gmra.mxu0 %v471_v1 }
 0x19c   :  { %1996 = vmatpush3.msra.mxu0 %v3055_v32  ;;  %2027 = vmatprep.mubr.msk.f32.mxu0 %vm2489_vm0, %v2488_v2  ;;  %v3200_v32 = vld [vmem:[#allocation7 + $0x110] sm:$0xff] }
 0x19d   :  { %1997 = vmatprep.subr.mxu0 %v2488_v2 }
 0x19e   :  { %1998 = vmatpush3.msra.mxu0 %v3061_v33  ;;  %v3204_v33 = vld [vmem:[#allocation7 + $0x108] sm:$0xff] }
 0x19f   :  { %1999 = vmatprep.subr.mxu0 %v2488_v2 }
 0x1a0   :  { %2000 = vmatpush3.msra.mxu0 %v3065_v34  ;;  %v3208_v34 = vld [vmem:[#allocation7 + $0x100] sm:$0xff] }
 0x1a1   :  { %2001 = vmatprep.subr.mxu0 %v2488_v2 }
 0x1a2   :  { %2002 = vmatpush3.msra.mxu0 %v3069_v35 }
 0x1a3   :  { %2003 = vmatprep.subr.mxu0 %v2488_v2 }
 0x1a4   :  { %2004 = vmatpush3.msra.mxu0 %v3073_v36  ;;  %v990_v36 = vld [vmem:[#allocation7 + $0x1f8] sm:$0xff] }
 0x1a5   :  { %2005 = vmatprep.subr.mxu0 %v2488_v2 }
 0x1a6   :  { %2006 = vmatpush3.msra.mxu0 %v3077_v37 }
 0x1a7   :  { %2007 = vmatprep.subr.mxu0 %v2488_v2 }
 0x1a8   :  { %2008 = vmatpush3.msra.mxu0 %v3081_v38 }
 0x1a9   :  { %2009 = vmatprep.subr.mxu0 %v2488_v2 }
 0x1aa   :  { %2010 = vmatpush3.msra.mxu0 %v3085_v39  ;;  %v989_v39 = vld [vmem:[#allocation7 + $0x1f0] sm:$0xff] }
 0x1ab   :  { %2011 = vmatprep.subr.mxu0 %v2488_v2 }
 0x1ac   :  { %2012 = vmatpush3.msra.mxu0 %v650_v42  ;;  %v988_v42 = vld [vmem:[#allocation7 + $0x1e8] sm:$0xff] }
 0x1ad   :  { %2013 = vmatprep.subr.mxu0 %v2488_v2 }
 0x1ae   :  { %2014 = vmatpush3.msra.mxu0 %v649_v45  ;;  %v987_v45 = vld [vmem:[#allocation7 + $0x1e0] sm:$0xff] }
 0x1af   :  { %2015 = vmatprep.subr.mxu0 %v2488_v2 }
 0x1b0   :  { %2016 = vmatpush3.msra.mxu0 %v648_v46  ;;  %v986_v46 = vld [vmem:[#allocation7 + $0x1d8] sm:$0xff] }
 0x1b1   :  { %2017 = vmatprep.subr.mxu0 %v2488_v2 }
 0x1b2   :  { %2018 = vmatpush3.msra.mxu0 %v647_v47  ;;  %v985_v47 = vld [vmem:[#allocation7 + $0x1d0] sm:$0xff] }
 0x1b3   :  { %2019 = vmatprep.subr.mxu0 %v2488_v2 }
 0x1b4   :  { %2020 = vmatpush3.msra.mxu0 %v646_v48  ;;  %v984_v48 = vld [vmem:[#allocation7 + $0x1c8] sm:$0xff] }
 0x1b5   :  { %2021 = vmatprep.subr.mxu0 %v2488_v2 }
 0x1b6   :  { %2022 = vmatpush3.msra.mxu0 %v645_v50  ;;  %v983_v50 = vld [vmem:[#allocation7 + $0x1c0] sm:$0xff] }
 0x1b7   :  { %2023 = vmatprep.subr.mxu0 %v2488_v2 }
 0x1b8   :  { %2024 = vmatpush3.msra.mxu0 %v644_v52  ;;  %v981_v52 = vld [vmem:[#allocation7 + $0x1b0] sm:$0xff] }
 0x1b9   :  { %2025 = vmatprep.subr.mxu0 %v2488_v2  ;;  %v637_v8 = vpop.f32.mrf.mxu1 }
 0x1ba   :  { %v641_v13 = vsel %vm86_vm13, %v637_v8, %v471_v1  ;;  %2026 = vmatpush3.msra.mxu0 %v643_v54  ;;  %v979_v54 = vld [vmem:[#allocation7 + $0x1a0] sm:$0xff]  ;;  %v1381_v8 = vld [vmem:[#allocation8 + $0x18] sm:$0xff] }
 0x1bb   :  { %2065 = vmatprep.subr.mxu0 %v2488_v2  ;;  %v1994_v16 = vpop.f32.mrf.mxu1  ;;  %2028 = vmatmul.mubr.f32.vlgmr.msra.gmra.mxu0 %v641_v13 }
 0x1bc   :  { %2066 = vmatpush3.msra.mxu0 %v3145_v9  ;;  %2097 = vmatprep.mubr.msk.f32.mxu0 %vm2489_vm0, %v2488_v2 }
 0x1bd   :  { %2067 = vmatprep.subr.mxu0 %v2488_v2 }
 0x1be   :  { %2068 = vmatpush3.msra.mxu0 %v3150_v40 }
 0x1bf   :  { %2069 = vmatprep.subr.mxu0 %v2488_v2 }
 0x1c0   :  { %2070 = vmatpush3.msra.mxu0 %v3156_v41 }
 0x1c1   :  { %2071 = vmatprep.subr.mxu0 %v2488_v2 }
 0x1c2   :  { %2072 = vmatpush3.msra.mxu0 %v3160_v49 }
 0x1c3   :  { %2073 = vmatprep.subr.mxu0 %v2488_v2 }
 0x1c4   :  { %2074 = vmatpush3.msra.mxu0 %v3164_v44 }
 0x1c5   :  { %2075 = vmatprep.subr.mxu0 %v2488_v2 }
 0x1c6   :  { %2076 = vmatpush3.msra.mxu0 %v3168_v4 }
 0x1c7   :  { %2077 = vmatprep.subr.mxu0 %v2488_v2 }
 0x1c8   :  { %2078 = vmatpush3.msra.mxu0 %v3172_v22 }
 0x1c9   :  { %2079 = vmatprep.subr.mxu0 %v2488_v2 }
 0x1ca   :  { %2080 = vmatpush3.msra.mxu0 %v3176_v26 }
 0x1cb   :  { %2081 = vmatprep.subr.mxu0 %v2488_v2 }
 0x1cc   :  { %2082 = vmatpush3.msra.mxu0 %v3180_v27 }
 0x1cd   :  { %2083 = vmatprep.subr.mxu0 %v2488_v2 }
 0x1ce   :  { %2084 = vmatpush3.msra.mxu0 %v3184_v28 }
 0x1cf   :  { %2085 = vmatprep.subr.mxu0 %v2488_v2 }
 0x1d0   :  { %2086 = vmatpush3.msra.mxu0 %v3188_v29 }
 0x1d1   :  { %2087 = vmatprep.subr.mxu0 %v2488_v2 }
 0x1d2   :  { %2088 = vmatpush3.msra.mxu0 %v3192_v30 }
 0x1d3   :  { %2089 = vmatprep.subr.mxu0 %v2488_v2 }
 0x1d4   :  { %2090 = vmatpush3.msra.mxu0 %v3196_v31 }
 0x1d5   :  { %2091 = vmatprep.subr.mxu0 %v2488_v2 }
 0x1d6   :  { %2092 = vmatpush3.msra.mxu0 %v3200_v32 }
 0x1d7   :  { %2093 = vmatprep.subr.mxu0 %v2488_v2 }
 0x1d8   :  { %2094 = vmatpush3.msra.mxu0 %v3204_v33 }
 0x1d9   :  { %2095 = vmatprep.subr.mxu0 %v2488_v2  ;;  %v803_v35 = vpop.f32.mrf.mxu1 }
 0x1da   :  { %v807_v37 = vsel %vm3103_vm14, %v803_v35, %v641_v13  ;;  %2096 = vmatpush3.msra.mxu0 %v3208_v34  ;;  %v82_v35 = vld [vmem:[%s3347_s4] sm:$0x1] }
 0x1db   :  { %2135 = vmatprep.subr.mxu0 %v2488_v2  ;;  %v2064_v38 = vpop.f32.mrf.mxu1  ;;  %2098 = vmatmul.mubr.f32.vlgmr.msra.gmra.mxu0 %v807_v37  ;;  %vm1284_vm3 = vcmp.ge.f32.partialorder %v82_v35, 5.0  ;;  %vm1367_vm4 = vcmp.ge.f32.partialorder %v82_v35, 6.0 }
 0x1dc   :  { %2136 = vmatpush3.msra.mxu0 %v990_v36  ;;  %2167 = vmatprep.mubr.msk.f32.mxu0 %vm2489_vm0, %v2488_v2  ;;  %v3371_v36 = vlaneseq }
 0x1dd   :  { %2137 = vmatprep.subr.mxu0 %v2488_v2 }
 0x1de   :  { %2138 = vmatpush3.msra.mxu0 %v989_v39 }
 0x1df   :  { %2139 = vmatprep.subr.mxu0 %v2488_v2 }
 0x1e0   :  { %2140 = vmatpush3.msra.mxu0 %v988_v42 }
 0x1e1   :  { %2141 = vmatprep.subr.mxu0 %v2488_v2 }
 0x1e2   :  { %2142 = vmatpush3.msra.mxu0 %v987_v45 }
 0x1e3   :  { %2143 = vmatprep.subr.mxu0 %v2488_v2 }
 0x1e4   :  { %2144 = vmatpush3.msra.mxu0 %v986_v46  ;;  %v1508_v46 = vsel %vm1284_vm3, 1.0, %v2488_v2 }
 0x1e5   :  { %2145 = vmatprep.subr.mxu0 %v2488_v2 }
 0x1e6   :  { %2146 = vmatpush3.msra.mxu0 %v985_v47 }
 0x1e7   :  { %2147 = vmatprep.subr.mxu0 %v2488_v2 }
 0x1e8   :  { %2148 = vmatpush3.msra.mxu0 %v984_v48 }
 0x1e9   :  { %2149 = vmatprep.subr.mxu0 %v2488_v2 }
 0x1ea   :  { %2150 = vmatpush3.msra.mxu0 %v983_v50 }
 0x1eb   :  { %2151 = vmatprep.subr.mxu0 %v2488_v2 }
 0x1ec   :  { %2152 = vmatpush3.msra.mxu0 %v982_v51 }
 0x1ed   :  { %2153 = vmatprep.subr.mxu0 %v2488_v2 }
 0x1ee   :  { %2154 = vmatpush3.msra.mxu0 %v981_v52  ;;  %v1511_v52 = vsel %vm1367_vm4, 1.0, %v2488_v2 }
 0x1ef   :  { %2155 = vmatprep.subr.mxu0 %v2488_v2 }
 0x1f0   :  { %2156 = vmatpush3.msra.mxu0 %v980_v53 }
 0x1f1   :  { %2157 = vmatprep.subr.mxu0 %v2488_v2 }
 0x1f2   :  { %2158 = vmatpush3.msra.mxu0 %v979_v54 }
 0x1f3   :  { %2159 = vmatprep.subr.mxu0 %v2488_v2 }
 0x1f4   :  { %2160 = vmatpush3.msra.mxu0 %v978_v55 }
 0x1f5   :  { %2161 = vmatprep.subr.mxu0 %v2488_v2 }
 0x1f6   :  { %2162 = vmatpush3.msra.mxu0 %v977_v56 }
 0x1f7   :  { %2163 = vmatprep.subr.mxu0 %v2488_v2 }
 0x1f8   :  { %2164 = vmatpush3.msra.mxu0 %v976_v57 }
 0x1f9   :  { %2165 = vmatprep.subr.mxu0 %v2488_v2  ;;  %v969_v61 = vpop.f32.mrf.mxu1 }
 0x1fa   :  { %v973_v62 = vsel %vm3107_vm15, %v969_v61, %v807_v37  ;;  %2166 = vmatpush3.msra.mxu0 %v975_v60  ;;  %v1289_v37 = vshrl.u32 %v3371_v36, 7 }
 0x1fb   :  { %2205 = vmatprep.subr.mxu0 %v2488_v2  ;;  %v2134_v63 = vpop.f32.mrf.mxu1  ;;  %2168 = vmatmul.mubr.f32.vlgmr.msra.gmra.mxu0 %v973_v62 }
 0x1fc   :  { %2206 = vmatpush3.msra.mxu0 %v2887_v5  ;;  %2237 = vmatprep.mubr.msk.f32.mxu0 %vm2489_vm0, %v2488_v2  ;;  %v1290_v45 = vsub.s32 0, %v1289_v37 }
 0x1fd   :  { %2207 = vmatprep.subr.mxu0 %v2488_v2 }
 0x1fe   :  { %2208 = vmatpush3.msra.mxu0 %v2891_v10  ;;  %v1291_v51 = vrot.slane %v1508_v46, %v1290_v45  ;;  %v1374_v60 = vrot.slane %v1511_v52, %v1290_v45 }
 0x1ff   :  { %2209 = vmatprep.subr.mxu0 %v2488_v2 }
 0x200   :  { %2210 = vmatpush3.msra.mxu0 %v2895_v12 }
 0x201   :  { %2211 = vmatprep.subr.mxu0 %v2488_v2 }
 0x202   :  { %2212 = vmatpush3.msra.mxu0 %v2901_v6 }
 0x203   :  { %2213 = vmatprep.subr.mxu0 %v2488_v2 }
 0x204   :  { %2214 = vmatpush3.msra.mxu0 %v2907_v7 }
 0x205   :  { %2215 = vmatprep.subr.mxu0 %v2488_v2 }
 0x206   :  { %2216 = vmatpush3.msra.mxu0 %v2913_v11 }
 0x207   :  { %2217 = vmatprep.subr.mxu0 %v2488_v2 }
 0x208   :  { %2218 = vmatpush3.msra.mxu0 %v2919_v14  ;;  %v1393_v14 = vld [vmem:[#allocation8 + $0x78] sm:$0xff] }
 0x209   :  { %2219 = vmatprep.subr.mxu0 %v2488_v2 }
 0x20a   :  { %2220 = vmatpush3.msra.mxu0 %v2925_v15  ;;  %v1392_v15 = vld [vmem:[#allocation8 + $0x70] sm:$0xff] }
 0x20b   :  { %2221 = vmatprep.subr.mxu0 %v2488_v2 }
 0x20c   :  { %2222 = vmatpush3.msra.mxu0 %v2931_v17  ;;  %v1391_v17 = vld [vmem:[#allocation8 + $0x68] sm:$0xff] }
 0x20d   :  { %2223 = vmatprep.subr.mxu0 %v2488_v2 }
 0x20e   :  { %2224 = vmatpush3.msra.mxu0 %v2937_v18  ;;  %v1390_v18 = vld [vmem:[#allocation8 + $0x60] sm:$0xff] }
 0x20f   :  { %2225 = vmatprep.subr.mxu0 %v2488_v2 }
 0x210   :  { %2226 = vmatpush3.msra.mxu0 %v2943_v19  ;;  %v1388_v19 = vld [vmem:[#allocation8 + $0x50] sm:$0xff] }
 0x211   :  { %2227 = vmatprep.subr.mxu0 %v2488_v2 }
 0x212   :  { %2228 = vmatpush3.msra.mxu0 %v2949_v20  ;;  %v1387_v20 = vld [vmem:[#allocation8 + $0x48] sm:$0xff] }
 0x213   :  { %2229 = vmatprep.subr.mxu0 %v2488_v2 }
 0x214   :  { %2230 = vmatpush3.msra.mxu0 %v2955_v21  ;;  %v1386_v21 = vld [vmem:[#allocation8 + $0x40] sm:$0xff] }
 0x215   :  { %2231 = vmatprep.subr.mxu0 %v2488_v2 }
 0x216   :  { %2232 = vmatpush3.msra.mxu0 %v2965_v23  ;;  %v1385_v23 = vld [vmem:[#allocation8 + $0x38] sm:$0xff] }
 0x217   :  { %2233 = vmatprep.subr.mxu0 %v2488_v2 }
 0x218   :  { %2234 = vmatpush3.msra.mxu0 %v2972_v24  ;;  %v1384_v24 = vld [vmem:[#allocation8 + $0x30] sm:$0xff] }
 0x219   :  { %2235 = vmatprep.subr.mxu0 %v2488_v2  ;;  %v1135_v5 = vpop.f32.mrf.mxu1 }
 0x21a   :  { %v1139_v10 = vsel %vm375_vm1, %v1135_v5, %v973_v62  ;;  %2236 = vmatpush3.msra.mxu0 %v2978_v25  ;;  %v1383_v25 = vld [vmem:[#allocation8 + $0x28] sm:$0xff] }
 0x21b   :  { %2275 = vmatprep.subr.mxu0 %v2488_v2  ;;  %v2204_v12 = vpop.f32.mrf.mxu1  ;;  %2238 = vmatmul.mubr.f32.vlgmr.msra.gmra.mxu0 %v1139_v10  ;;  %v1212_v6 = vsel %vm86_vm13, 0.0, %v1139_v10 }
 0x21c   :  { %2273 = vmatmul.mubr.msk.f32.vlgmr.msra.gmra.mxu1 %vm1506_vm2, %v1139_v10  ;;  %2276 = vmatpush3.msra.mxu0 %v3145_v9  ;;  %v1512_v12 = vld [vmem:[%s3349_s6] ss:$0 sm:$0xff] }
 0x21d   :  { %2277 = vmatprep.subr.mxu0 %v2488_v2  ;;  %2307 = vmatprep.mubr.msk.f32.mxu0 %vm2489_vm0, %v2488_v2 }
 0x21e   :  { %2278 = vmatpush3.msra.mxu0 %v3150_v40  ;;  %2342 = vmatprep.mubr.msk.f32.mxu1 %vm2489_vm0, %v2488_v2  ;;  %vm1509_vm0 = vmneg %vm3103_vm14  ;;  %v1380_v40 = vld [vmem:[#allocation8 + $0x10] sm:$0xff] }
 0x21f   :  { %2279 = vmatprep.subr.mxu0 %v2488_v2  ;;  %2311 = vmatpush3.msra.mxu1 %v1393_v14 }
 0x220   :  { %2280 = vmatpush3.msra.mxu0 %v3156_v41  ;;  %2312 = vmatprep.subr.mxu1 %v2488_v2 }
 0x221   :  { %2281 = vmatprep.subr.mxu0 %v2488_v2  ;;  %2313 = vmatpush3.msra.mxu1 %v1392_v15 }
 0x222   :  { %2282 = vmatpush3.msra.mxu0 %v3160_v49  ;;  %2314 = vmatprep.subr.mxu1 %v2488_v2  ;;  %v1379_v49 = vld [vmem:[#allocation8 + $0x8] sm:$0xff] }
 0x223   :  { %2283 = vmatprep.subr.mxu0 %v2488_v2  ;;  %2315 = vmatpush3.msra.mxu1 %v1391_v17 }
 0x224   :  { %2284 = vmatpush3.msra.mxu0 %v3164_v44  ;;  %2316 = vmatprep.subr.mxu1 %v2488_v2  ;;  %v1378_v44 = vld [vmem:[#allocation8] sm:$0xff] }
 0x225   :  { %2285 = vmatprep.subr.mxu0 %v2488_v2  ;;  %2317 = vmatpush3.msra.mxu1 %v1390_v18 }
 0x226   :  { %2286 = vmatpush3.msra.mxu0 %v3168_v4  ;;  %2318 = vmatprep.subr.mxu1 %v2488_v2 }
 0x227   :  { %2287 = vmatprep.subr.mxu0 %v2488_v2  ;;  %2319 = vmatpush3.msra.mxu1 %v1389_v43 }
 0x228   :  { %2288 = vmatpush3.msra.mxu0 %v3172_v22  ;;  %2320 = vmatprep.subr.mxu1 %v2488_v2 }
 0x229   :  { %2289 = vmatprep.subr.mxu0 %v2488_v2  ;;  %2321 = vmatpush3.msra.mxu1 %v1388_v19 }
 0x22a   :  { %2290 = vmatpush3.msra.mxu0 %v3176_v26  ;;  %2322 = vmatprep.subr.mxu1 %v2488_v2 }
 0x22b   :  { %2291 = vmatprep.subr.mxu0 %v2488_v2  ;;  %2323 = vmatpush3.msra.mxu1 %v1387_v20 }
 0x22c   :  { %2292 = vmatpush3.msra.mxu0 %v3180_v27  ;;  %2324 = vmatprep.subr.mxu1 %v2488_v2 }
 0x22d   :  { %2293 = vmatprep.subr.mxu0 %v2488_v2  ;;  %2325 = vmatpush3.msra.mxu1 %v1386_v21 }
 0x22e   :  { %2294 = vmatpush3.msra.mxu0 %v3184_v28  ;;  %2326 = vmatprep.subr.mxu1 %v2488_v2 }
 0x22f   :  { %2295 = vmatprep.subr.mxu0 %v2488_v2  ;;  %2327 = vmatpush3.msra.mxu1 %v1385_v23 }
 0x230   :  { %2296 = vmatpush3.msra.mxu0 %v3188_v29  ;;  %2328 = vmatprep.subr.mxu1 %v2488_v2 }
 0x231   :  { %2297 = vmatprep.subr.mxu0 %v2488_v2  ;;  %2329 = vmatpush3.msra.mxu1 %v1384_v24 }
 0x232   :  { %2298 = vmatpush3.msra.mxu0 %v3192_v30  ;;  %2330 = vmatprep.subr.mxu1 %v2488_v2 }
 0x233   :  { %2299 = vmatprep.subr.mxu0 %v2488_v2  ;;  %2331 = vmatpush3.msra.mxu1 %v1383_v25 }
 0x234   :  { %2300 = vmatpush3.msra.mxu0 %v3196_v31  ;;  %2332 = vmatprep.subr.mxu1 %v2488_v2 }
 0x235   :  { %2301 = vmatprep.subr.mxu0 %v2488_v2  ;;  %2333 = vmatpush3.msra.mxu1 %v1382_v0 }
 0x236   :  { %2302 = vmatpush3.msra.mxu0 %v3200_v32  ;;  %2334 = vmatprep.subr.mxu1 %v2488_v2 }
 0x237   :  { %2303 = vmatprep.subr.mxu0 %v2488_v2  ;;  %2335 = vmatpush3.msra.mxu1 %v1381_v8 }
 0x238   :  { %2304 = vmatpush3.msra.mxu0 %v3204_v33  ;;  %2336 = vmatprep.subr.mxu1 %v2488_v2 }
 0x239   :  { %2305 = vmatprep.subr.mxu0 %v2488_v2  ;;  %2337 = vmatpush3.msra.mxu1 %v1380_v40 }
 0x23a   :  { %2306 = vmatpush3.msra.mxu0 %v3208_v34  ;;  %2338 = vmatprep.subr.mxu1 %v2488_v2 }
 0x23b   :  { %2308 = vmatmul.mubr.msk.f32.vlgmr.msra.gmra.mxu0 %vm1509_vm0, %v1212_v6  ;;  %2339 = vmatpush3.msra.mxu1 %v1379_v49 }
 0x23c   :  { %2340 = vmatprep.subr.mxu1 %v2488_v2 }
 0x23d   :  { %2341 = vmatpush3.msra.mxu1 %v1378_v44 }
 0x25b   :  { %v560_v7 = vpop.f32.mrf.mxu0 }
 0x25c   :  { %v561_v59 = vadd.f32 %v1497_v58, %v560_v7 }
 0x25d   :  { %v1959_v11 = vpop.f32.mrf.mxu0 }
 0x25e   :  { %v564_v13 = vmax.f32 %v561_v59, 0.0 }
 0x27b   :  { %v725_v1 = vpop.f32.mrf.mxu0 }
 0x27c   :  { %v726_v3 = vadd.f32 %v1497_v58, %v725_v1 }
 0x27d   :  { %v2029_v9 = vpop.f32.mrf.mxu0 }
 0x27e   :  { %v729_v16 = vmax.f32 %v726_v3, 0.0 }
 0x280   :  { %v730_v41 = vmax.f32 %v564_v13, %v729_v16 }
 0x29b   :  { %v891_v4 = vpop.f32.mrf.mxu0 }
 0x29c   :  { %v892_v22 = vadd.f32 %v1497_v58, %v891_v4 }
 0x29d   :  { %v2099_v26 = vpop.f32.mrf.mxu0 }
 0x29e   :  { %v895_v27 = vmax.f32 %v892_v22, 0.0 }
 0x2a0   :  { %v896_v28 = vmax.f32 %v730_v41, %v895_v27 }
 0x2bb   :  { %v1057_v29 = vpop.f32.mrf.mxu0 }
 0x2bc   :  { %v1058_v38 = vadd.f32 %v1497_v58, %v1057_v29 }
 0x2bd   :  { %v2169_v30 = vpop.f32.mrf.mxu0 }
 0x2be   :  { %v1061_v47 = vmax.f32 %v1058_v38, 0.0 }
 0x2c0   :  { %v1062_v53 = vmax.f32 %v896_v28, %v1061_v47 }
 0x2db   :  { %v1206_v31 = vpop.f32.mrf.mxu0 }
 0x2dc   :  { %v1279_v32 = vpop.f32.mrf.mxu1  ;;  %v1207_v39 = vadd.f32 %v1497_v58, %v1206_v31 }
 0x2dd   :  { %v2239_v33 = vpop.f32.mrf.mxu0  ;;  %v1280_v42 = vadd.f32 %v1497_v58, %v1279_v32 }
 0x2de   :  { %v2274_v34 = vpop.f32.mrf.mxu1  ;;  %v1210_v48 = vmax.f32 %v1207_v39, 0.0 }
 0x2df   :  { %v1283_v50 = vmax.f32 %v1280_v42, 0.0 }
 0x2e0   :  { %v1211_v55 = vmax.f32 %v1062_v53, %v1210_v48 }
 0x2e1   :  { %v1293_v56 = vmul.f32 %v1291_v51, %v1283_v50 }
 0x2e3   :  { %v1294_v63 = vmax.f32 %v1211_v55, %v1293_v56 }
 0x2fb   :  { %v1362_v54 = vpop.f32.mrf.mxu0 }
 0x2fc   :  { %v1363_v57 = vadd.f32 %v1497_v58, %v1362_v54 }
 0x2fd   :  { %v2309_v61 = vpop.f32.mrf.mxu0 }
 0x2fe   :  { %v1366_v62 = vmax.f32 %v1363_v57, 0.0 }
 0x300   :  { %v1376_v5 = vmul.f32 %v1374_v60, %v1366_v62 }
 0x302   :  { %v1377_v10 = vmax.f32 %v1294_v63, %v1376_v5 }
 0x304   :  { %2343 = vmatmul.mubr.f32.vlgmr.msra.gmra.mxu1 %v1377_v10 }
 0x3c4   :  { %v1467_v6 = vpop.f32.mrf.mxu1 }
 0x3c5   :  { %v1468_v2 = vadd.f32 %v1512_v12, %v1467_v6 }
 0x3c6   :  { %v2344_v7 = vpop.f32.mrf.mxu1 }
 0x3c7   :  { %1471 = vst [vmem:[#allocation10] sm:$0xff] %v1468_v2 }
 0x3c8   :  { %2463 = shalt.err (!%p2460_p10)
}
 0x3c9   :  { %1481 = dma.vmem_to_hbm [thread:$0]  %s1479_s24, 128, %s3350_s7, [#allocation4]  }
 0x3ca   :  { %2478 = dma.done.wait [#allocation4], 128  }
 0x3cb   :  { %2479 = vsyncadd [#allocation4], 4294967168 }
 0x3cc   :  { %1485 = vsyncpa [#allocation3], 1 }
 0x3cd   :  { %1486 = vsyncpa [#allocation6], 1 }
 0x3ce   :  { %1487 = vsyncpa [#allocation9], 1 }
 0x3cf   :  { %1488 = vsyncpa [#allocation4], 1 }

</bundles_post_ra>
